<compile_context>
chip_gen: v5e
topology: v5e:2x2
jax: 0.10.0
libtpu: 0.0.40
codegen_flags: <defaults>
</compile_context>

<pallas_src>
import functools

import jax
import jax.numpy as jnp
from jax import lax
from jax.experimental import pallas as pl
from jax.experimental.pallas import tpu as pltpu


def _lstm_dir_kernel(lens_ref, x_ref, wih_ref, whh_ref, b_ref,
                     out_ref, hn_ref, cn_ref, pre_sc):
    """One LSTM direction over the full sequence (direction = grid index).

    lens_ref: (B, 1) int32
    x_ref:    (T*B, D)      shared between both directions
    wih_ref:  (D, 4H)       W_ih^T for this direction
    whh_ref:  (H, 4H)       W_hh^T for this direction
    b_ref:    (1, 4H)       b_ih + b_hh
    out_ref:  (T, B, H)
    hn_ref:   (B, H)
    cn_ref:   (B, H)
    pre_sc:   (T*B, 4H) VMEM scratch (hoisted input projection)
    """
    T, B, H = out_ref.shape

    d = pl.program_id(0)            # 0 = forward, 1 = backward
    base = (T - 1) * d              # first time index for this direction
    sign = 1 - 2 * d                # +1 forward, -1 backward

    # Hoisted (loop-invariant) reads.
    lens_v = lens_ref[...]          # (B, 1) int32
    whh = whh_ref[...]              # (H, 4H)

    # Hoisted input projection: one big MXU matmul over the whole sequence,
    # bias folded in — removed from the serial recurrence.
    pre_sc[...] = (
        jnp.dot(x_ref[...], wih_ref[...], preferred_element_type=jnp.float32)
        + b_ref[...])               # (T*B, 4H)

    def step(s, carry):
        h, c = carry
        t = base + sign * s         # forward: s ; backward: T-1-s (in-kernel reversal)

        gates = (pre_sc[pl.ds(t * B, B), :]
                 + jnp.dot(h, whh, preferred_element_type=jnp.float32))
        i = jax.nn.sigmoid(gates[:, 0:H])
        f = jax.nn.sigmoid(gates[:, H:2 * H])
        g = jnp.tanh(gates[:, 2 * H:3 * H])
        o = jax.nn.sigmoid(gates[:, 3 * H:4 * H])

        c_new = f * c + i * g
        h_new = o * jnp.tanh(c_new)

        # packed-sequence mask: freeze state and zero output for t >= length
        valid = lens_v > t          # (B, 1) bool
        h = jnp.where(valid, h_new, h)
        c = jnp.where(valid, c_new, c)
        out_ref[t] = jnp.where(valid, h_new, 0.0).astype(out_ref.dtype)
        return h, c

    h0 = jnp.zeros((B, H), jnp.float32)
    c0 = jnp.zeros((B, H), jnp.float32)
    h, c = lax.fori_loop(0, T, step, (h0, c0), unroll=True)

    hn_ref[...] = h.astype(hn_ref.dtype)
    cn_ref[...] = c.astype(cn_ref.dtype)


def _run_lstm_bidir(x2d, lens_col, w_ih, w_hh, bias, *, T, B):
    """x2d: (T*B, D) time-major flattened input (shared by both directions).
    Returns (outs (2,T,B,H), h_n (2,B,H), c_n (2,B,H))."""
    D = x2d.shape[1]
    H = w_hh.shape[1]
    G = 4 * H

    grid_spec = pltpu.PrefetchScalarGridSpec(
        num_scalar_prefetch=0,
        grid=(2,),
        in_specs=[
            pl.BlockSpec((B, 1), lambda d: (0, 0)),           # lens
            pl.BlockSpec((T * B, D), lambda d: (0, 0)),       # x (shared block)
            pl.BlockSpec((None, D, G), lambda d: (d, 0, 0)),  # W_ih^T
            pl.BlockSpec((None, H, G), lambda d: (d, 0, 0)),  # W_hh^T
            pl.BlockSpec((None, 1, G), lambda d: (d, 0, 0)),  # bias
        ],
        out_specs=[
            pl.BlockSpec((None, T, B, H), lambda d: (d, 0, 0, 0)),  # outputs
            pl.BlockSpec((None, B, H), lambda d: (d, 0, 0)),        # h_n
            pl.BlockSpec((None, B, H), lambda d: (d, 0, 0)),        # c_n
        ],
        scratch_shapes=[
            pltpu.VMEM((T * B, G), jnp.float32),   # hoisted input projection
        ],
    )

    out_shapes = (
        jax.ShapeDtypeStruct((2, T, B, H), jnp.float32),
        jax.ShapeDtypeStruct((2, B, H), jnp.float32),
        jax.ShapeDtypeStruct((2, B, H), jnp.float32),
    )

    return pl.pallas_call(
        _lstm_dir_kernel,
        out_shape=out_shapes,
        grid_spec=grid_spec,
        compiler_params=pltpu.CompilerParams(
            dimension_semantics=("parallel",)),   # directions are independent
    )(lens_col, x2d, w_ih, w_hh, bias)


@functools.partial(jax.jit, static_argnames=())
def encoder_rnn_forward(src_feats, src_lens, params):
    """Bidirectional single-layer LSTM encoder.

    src_feats: (T, B, D) float32
    src_lens:  (B,) int32 (sorted descending, as pack_padded_sequence requires)
    params: per-direction stacked weights:
      'w_ih': (2, D, 4H), 'w_hh': (2, H, 4H), 'b': (2, 1, 4H)
    """
    T, B, D = src_feats.shape

    # Free row-major view; no duplicated / reversed copy of x is built anymore.
    x2d = src_feats.reshape(T * B, D)
    lens_col = src_lens.astype(jnp.int32)[:, None]      # (B, 1)

    outs, h_n, c_n = _run_lstm_bidir(
        x2d, lens_col, params["w_ih"], params["w_hh"], params["b"], T=T, B=B)

    outputs = jnp.concatenate([outs[0], outs[1]], axis=2)       # (T, B, 2H)

    # _cat_directions: (num_dirs, B, H) -> (num_layers=1, B, 2H), then
    # torch.cat((h, c), 0) -> (2, B, 2H)
    h_cat = jnp.concatenate([h_n[0:1], h_n[1:2]], axis=2)
    c_cat = jnp.concatenate([c_n[0:1], c_n[1:2]], axis=2)
    hidden = jnp.concatenate([h_cat, c_cat], axis=0)

    return outputs, hidden


# ----------------------------- pure-JAX reference -----------------------------
def _lstm_dir_ref(x, lens, w_ih, w_hh, b):
    T, B, D = x.shape
    H = w_hh.shape[0]

    def step(carry, inp):
        h, c = carry
        x_t, t = inp
        gates = x_t @ w_ih + h @ w_hh + b
        i = jax.nn.sigmoid(gates[:, :H])
        f = jax.nn.sigmoid(gates[:, H:2 * H])
        g = jnp.tanh(gates[:, 2 * H:3 * H])
        o = jax.nn.sigmoid(gates[:, 3 * H:])
        c_new = f * c + i * g
        h_new = o * jnp.tanh(c_new)
        mask = (lens > t).astype(x.dtype)[:, None]
        h2 = mask * h_new + (1 - mask) * h
        c2 = mask * c_new + (1 - mask) * c
        return (h2, c2), mask * h_new

    init = (jnp.zeros((B, H), x.dtype), jnp.zeros((B, H), x.dtype))
    (h, c), outs = lax.scan(step, init, (x, jnp.arange(T)))
    return outs, h, c


def encoder_rnn_reference(src_feats, src_lens, params):
    T, B, D = src_feats.shape
    t_idx = jnp.arange(T)[:, None]
    L = src_lens[None, :]
    rev_idx = jnp.where(t_idx < L, L - 1 - t_idx, t_idx)
    x_rev = jnp.take_along_axis(src_feats, rev_idx[:, :, None], axis=0)

    of, hf, cf = _lstm_dir_ref(src_feats, src_lens,
                               params["w_ih"][0], params["w_hh"][0],
                               params["b"][0, 0])
    obr, hb, cb = _lstm_dir_ref(x_rev, src_lens,
                                params["w_ih"][1], params["w_hh"][1],
                                params["b"][1, 0])
    ob = jnp.take_along_axis(obr, rev_idx[:, :, None], axis=0)
    outputs = jnp.concatenate([of, ob], axis=2)
    h_cat = jnp.concatenate([hf[None], hb[None]], axis=2)
    c_cat = jnp.concatenate([cf[None], cb[None]], axis=2)
    hidden = jnp.concatenate([h_cat, c_cat], axis=0)
    return outputs, hidden


if __name__ == "__main__":
    # Module config: EncoderRNN(input_size=8, hidden_size=32) ->
    #   per-direction hidden H = 16, bidirectional LSTM, num_layers=1.
    T, B, D = 8, 2, 8
    HIDDEN = 32
    H = HIDDEN // 2
    G = 4 * H

    key = jax.random.PRNGKey(0)
    k_x, k_wih, k_whh, k_bih, k_bhh = jax.random.split(key, 5)

    src_feats = jax.random.normal(k_x, (T, B, D), dtype=jnp.float32)
    src_lens = jnp.array([8, 5], dtype=jnp.int32)  # sorted descending

    # PyTorch-style uniform(-1/sqrt(H), 1/sqrt(H)) init, deterministic.
    k_init = 1.0 / jnp.sqrt(jnp.float32(H))
    # Stored pre-transposed: W_ih^T (D, 4H), W_hh^T (H, 4H); gate order i,f,g,o.
    w_ih = jax.random.uniform(k_wih, (2, D, G), jnp.float32, -k_init, k_init)
    w_hh = jax.random.uniform(k_whh, (2, H, G), jnp.float32, -k_init, k_init)
    b_ih = jax.random.uniform(k_bih, (2, 1, G), jnp.float32, -k_init, k_init)
    b_hh = jax.random.uniform(k_bhh, (2, 1, G), jnp.float32, -k_init, k_init)
    params = {"w_ih": w_ih, "w_hh": w_hh, "b": b_ih + b_hh}

    outputs, hidden = encoder_rnn_forward(src_feats, src_lens, params)
    jax.block_until_ready((outputs, hidden))

    ref_out, ref_hid = encoder_rnn_reference(src_feats, src_lens, params)
    assert outputs.shape == (T, B, HIDDEN)
    assert hidden.shape == (2, B, HIDDEN)
    assert jnp.allclose(outputs, ref_out, atol=1e-4, rtol=1e-4)
    assert jnp.allclose(hidden, ref_hid, atol=1e-4, rtol=1e-4)

    print("KERNEL_OK")
</pallas_src>

<mosaic_0001>
module attributes {stable_mosaic.version = 11 : i64} {
  func.func @_lstm_dir_kernel(%arg0: i32, %arg1: memref<2x1xi32, #tpu.memory_space<vmem>>, %arg2: memref<16x8xf32, #tpu.memory_space<vmem>>, %arg3: memref<1x8x64xf32, #tpu.memory_space<vmem>>, %arg4: memref<1x16x64xf32, #tpu.memory_space<vmem>>, %arg5: memref<1x1x64xf32, #tpu.memory_space<vmem>>, %arg6: memref<1x8x2x16xf32, #tpu.memory_space<vmem>>, %arg7: memref<1x2x16xf32, #tpu.memory_space<vmem>>, %arg8: memref<1x2x16xf32, #tpu.memory_space<vmem>>, %arg9: memref<16x64xf32, #tpu.memory_space<vmem>>) attributes {dimension_semantics = [#tpu.dimension_semantics<parallel>], iteration_bounds = array<i64: 2>, scalar_prefetch = 0 : i64, scratch_operands = 1 : i64, tpu.core_type = #tpu.core_type<tc>, window_params = [{pipeline_mode = #tpu.pipeline_mode<synchronous>, transform_indices = @transform_0, window_bounds = array<i64: 2, 1>}, {pipeline_mode = #tpu.pipeline_mode<synchronous>, transform_indices = @transform_1, window_bounds = array<i64: 16, 8>}, {transform_indices = @transform_2, window_bounds = array<i64: 1, 8, 64>}, {transform_indices = @transform_3, window_bounds = array<i64: 1, 16, 64>}, {transform_indices = @transform_4, window_bounds = array<i64: 1, 1, 64>}, {transform_indices = @transform_5, window_bounds = array<i64: 1, 8, 2, 16>}, {transform_indices = @transform_6, window_bounds = array<i64: 1, 2, 16>}, {transform_indices = @transform_7, window_bounds = array<i64: 1, 2, 16>}]} {
    %c7_i32 = arith.constant 7 : i32
    %0 = arith.muli %c7_i32, %arg0 : i32
    %c2_i32 = arith.constant 2 : i32
    %1 = arith.muli %c2_i32, %arg0 : i32
    %c1_i32 = arith.constant 1 : i32
    %2 = arith.subi %c1_i32, %1 : i32
    %c0 = arith.constant 0 : index
    %c0_0 = arith.constant 0 : index
    %3 = vector.load %arg1[%c0, %c0_0] : memref<2x1xi32, #tpu.memory_space<vmem>>, vector<2x1xi32>
    %c0_1 = arith.constant 0 : index
    %c0_2 = arith.constant 0 : index
    %c0_3 = arith.constant 0 : index
    %4 = vector.load %arg4[%c0_1, %c0_2, %c0_3] : memref<1x16x64xf32, #tpu.memory_space<vmem>>, vector<1x16x64xf32>
    %5 = vector.shape_cast %4 : vector<1x16x64xf32> to vector<16x64xf32>
    %c0_4 = arith.constant 0 : index
    %c0_5 = arith.constant 0 : index
    %6 = vector.load %arg2[%c0_4, %c0_5] : memref<16x8xf32, #tpu.memory_space<vmem>>, vector<16x8xf32>
    %c0_6 = arith.constant 0 : index
    %c0_7 = arith.constant 0 : index
    %c0_8 = arith.constant 0 : index
    %7 = vector.load %arg3[%c0_6, %c0_7, %c0_8] : memref<1x8x64xf32, #tpu.memory_space<vmem>>, vector<1x8x64xf32>
    %8 = vector.shape_cast %7 : vector<1x8x64xf32> to vector<8x64xf32>
    %cst = arith.constant dense<0.000000e+00> : vector<16x64xf32>
    %9 = tpu.matmul %6, %8, %cst {dimension_numbers = #tpu.dot_dimension_numbers<[1], [0], [0], [1], [0, 0, 1, 1], [], []>} : vector<16x8xf32>, vector<8x64xf32>, vector<16x64xf32> -> vector<16x64xf32>
    %c0_9 = arith.constant 0 : index
    %c0_10 = arith.constant 0 : index
    %c0_11 = arith.constant 0 : index
    %10 = vector.load %arg5[%c0_9, %c0_10, %c0_11] : memref<1x1x64xf32, #tpu.memory_space<vmem>>, vector<1x1x64xf32>
    %11 = vector.shape_cast %10 : vector<1x1x64xf32> to vector<1x64xf32>
    %12 = vector.broadcast %11 : vector<1x64xf32> to vector<16x64xf32>
    %13 = arith.addf %9, %12 : vector<16x64xf32>
    %c0_12 = arith.constant 0 : index
    %c0_13 = arith.constant 0 : index
    %14 = vector.load %arg9[%c0_12, %c0_13] : memref<16x64xf32, #tpu.memory_space<vmem>>, vector<16x64xf32>
    tpu.vector_store %arg9[%c0_12, %c0_13], %13 {strides = array<i32>} : memref<16x64xf32, #tpu.memory_space<vmem>>, vector<16x64xf32>,
    %cst_14 = arith.constant 0.000000e+00 : f32
    %15 = vector.broadcast %cst_14 : f32 to vector<2x16xf32>
    %cst_15 = arith.constant 0.000000e+00 : f32
    %16 = vector.broadcast %cst_15 : f32 to vector<2x16xf32>
    %c0_i32 = arith.constant 0 : i32
    %17 = arith.muli %2, %c0_i32 : i32
    %18 = arith.addi %0, %17 : i32
    %c2_i32_16 = arith.constant 2 : i32
    %19 = arith.muli %18, %c2_i32_16 : i32
    %20 = arith.index_cast %19 : i32 to index
    %c0_17 = arith.constant 0 : index
    %21 = vector.load %arg9[%20, %c0_17] : memref<16x64xf32, #tpu.memory_space<vmem>>, vector<2x64xf32>
    %cst_18 = arith.constant dense<0.000000e+00> : vector<2x64xf32>
    %22 = tpu.matmul %15, %5, %cst_18 {dimension_numbers = #tpu.dot_dimension_numbers<[1], [0], [0], [1], [0, 0, 1, 1], [], []>} : vector<2x16xf32>, vector<16x64xf32>, vector<2x64xf32> -> vector<2x64xf32>
    %23 = arith.addf %21, %22 : vector<2x64xf32>
    %24 = vector.extract_strided_slice %23 {offsets = [0, 0], sizes = [2, 16], strides = [1, 1]} : vector<2x64xf32> to vector<2x16xf32>
    %25 = arith.negf %24 : vector<2x16xf32>
    %26 = math.exp %25 : vector<2x16xf32>
    %cst_19 = arith.constant 1.000000e+00 : f32
    %27 = vector.broadcast %cst_19 : f32 to vector<2x16xf32>
    %28 = arith.addf %27, %26 : vector<2x16xf32>
    %29 = arith.divf %27, %28 : vector<2x16xf32>
    %30 = vector.extract_strided_slice %23 {offsets = [0, 16], sizes = [2, 16], strides = [1, 1]} : vector<2x64xf32> to vector<2x16xf32>
    %31 = arith.negf %30 : vector<2x16xf32>
    %32 = math.exp %31 : vector<2x16xf32>
    %cst_20 = arith.constant 1.000000e+00 : f32
    %33 = vector.broadcast %cst_20 : f32 to vector<2x16xf32>
    %34 = arith.addf %33, %32 : vector<2x16xf32>
    %35 = arith.divf %33, %34 : vector<2x16xf32>
    %36 = vector.extract_strided_slice %23 {offsets = [0, 32], sizes = [2, 16], strides = [1, 1]} : vector<2x64xf32> to vector<2x16xf32>
    %37 = math.tanh %36 : vector<2x16xf32>
    %38 = vector.extract_strided_slice %23 {offsets = [0, 48], sizes = [2, 16], strides = [1, 1]} : vector<2x64xf32> to vector<2x16xf32>
    %39 = arith.negf %38 : vector<2x16xf32>
    %40 = math.exp %39 : vector<2x16xf32>
    %cst_21 = arith.constant 1.000000e+00 : f32
    %41 = vector.broadcast %cst_21 : f32 to vector<2x16xf32>
    %42 = arith.addf %41, %40 : vector<2x16xf32>
    %43 = arith.divf %41, %42 : vector<2x16xf32>
    %44 = arith.mulf %35, %16 : vector<2x16xf32>
    %45 = arith.mulf %29, %37 : vector<2x16xf32>
    %46 = arith.addf %44, %45 : vector<2x16xf32>
    %47 = math.tanh %46 : vector<2x16xf32>
    %48 = arith.mulf %43, %47 : vector<2x16xf32>
    %49 = vector.broadcast %18 : i32 to vector<2x1xi32>
    %50 = arith.cmpi sgt, %3, %49 : vector<2x1xi32>
    %51 = vector.shape_cast %50 : vector<2x1xi1> to vector<2x1xi1>
    %52 = vector.broadcast %51 : vector<2x1xi1> to vector<2x16xi1>
    %53 = arith.select %52, %48, %15 : vector<2x16xi1>, vector<2x16xf32>
    %54 = vector.shape_cast %50 : vector<2x1xi1> to vector<2x1xi1>
    %55 = vector.broadcast %54 : vector<2x1xi1> to vector<2x16xi1>
    %56 = arith.select %55, %46, %16 : vector<2x16xi1>, vector<2x16xf32>
    %cst_22 = arith.constant 0.000000e+00 : f32
    %57 = vector.shape_cast %50 : vector<2x1xi1> to vector<2x1xi1>
    %58 = vector.broadcast %57 : vector<2x1xi1> to vector<2x16xi1>
    %59 = vector.broadcast %cst_22 : f32 to vector<2x16xf32>
    %60 = arith.select %58, %48, %59 : vector<2x16xi1>, vector<2x16xf32>
    %c0_23 = arith.constant 0 : index
    %61 = arith.index_cast %18 : i32 to index
    %c0_24 = arith.constant 0 : index
    %c0_25 = arith.constant 0 : index
    %62 = vector.load %arg6[%c0_23, %61, %c0_24, %c0_25] : memref<1x8x2x16xf32, #tpu.memory_space<vmem>>, vector<1x1x2x16xf32>
    %63 = vector.shape_cast %62 : vector<1x1x2x16xf32> to vector<2x16xf32>
    %64 = vector.shape_cast %60 : vector<2x16xf32> to vector<1x1x2x16xf32>
    tpu.vector_store %arg6[%c0_23, %61, %c0_24, %c0_25], %64 {strides = array<i32>} : memref<1x8x2x16xf32, #tpu.memory_space<vmem>>, vector<1x1x2x16xf32>,
    %c1_i32_26 = arith.constant 1 : i32
    %65 = arith.muli %2, %c1_i32_26 : i32
    %66 = arith.addi %0, %65 : i32
    %c2_i32_27 = arith.constant 2 : i32
    %67 = arith.muli %66, %c2_i32_27 : i32
    %68 = arith.index_cast %67 : i32 to index
    %c0_28 = arith.constant 0 : index
    %69 = vector.load %arg9[%68, %c0_28] : memref<16x64xf32, #tpu.memory_space<vmem>>, vector<2x64xf32>
    %cst_29 = arith.constant dense<0.000000e+00> : vector<2x64xf32>
    %70 = tpu.matmul %53, %5, %cst_29 {dimension_numbers = #tpu.dot_dimension_numbers<[1], [0], [0], [1], [0, 0, 1, 1], [], []>} : vector<2x16xf32>, vector<16x64xf32>, vector<2x64xf32> -> vector<2x64xf32>
    %71 = arith.addf %69, %70 : vector<2x64xf32>
    %72 = vector.extract_strided_slice %71 {offsets = [0, 0], sizes = [2, 16], strides = [1, 1]} : vector<2x64xf32> to vector<2x16xf32>
    %73 = arith.negf %72 : vector<2x16xf32>
    %74 = math.exp %73 : vector<2x16xf32>
    %cst_30 = arith.constant 1.000000e+00 : f32
    %75 = vector.broadcast %cst_30 : f32 to vector<2x16xf32>
    %76 = arith.addf %75, %74 : vector<2x16xf32>
    %77 = arith.divf %75, %76 : vector<2x16xf32>
    %78 = vector.extract_strided_slice %71 {offsets = [0, 16], sizes = [2, 16], strides = [1, 1]} : vector<2x64xf32> to vector<2x16xf32>
    %79 = arith.negf %78 : vector<2x16xf32>
    %80 = math.exp %79 : vector<2x16xf32>
    %cst_31 = arith.constant 1.000000e+00 : f32
    %81 = vector.broadcast %cst_31 : f32 to vector<2x16xf32>
    %82 = arith.addf %81, %80 : vector<2x16xf32>
    %83 = arith.divf %81, %82 : vector<2x16xf32>
    %84 = vector.extract_strided_slice %71 {offsets = [0, 32], sizes = [2, 16], strides = [1, 1]} : vector<2x64xf32> to vector<2x16xf32>
    %85 = math.tanh %84 : vector<2x16xf32>
    %86 = vector.extract_strided_slice %71 {offsets = [0, 48], sizes = [2, 16], strides = [1, 1]} : vector<2x64xf32> to vector<2x16xf32>
    %87 = arith.negf %86 : vector<2x16xf32>
    %88 = math.exp %87 : vector<2x16xf32>
    %cst_32 = arith.constant 1.000000e+00 : f32
    %89 = vector.broadcast %cst_32 : f32 to vector<2x16xf32>
    %90 = arith.addf %89, %88 : vector<2x16xf32>
    %91 = arith.divf %89, %90 : vector<2x16xf32>
    %92 = arith.mulf %83, %56 : vector<2x16xf32>
    %93 = arith.mulf %77, %85 : vector<2x16xf32>
    %94 = arith.addf %92, %93 : vector<2x16xf32>
    %95 = math.tanh %94 : vector<2x16xf32>
    %96 = arith.mulf %91, %95 : vector<2x16xf32>
    %97 = vector.broadcast %66 : i32 to vector<2x1xi32>
    %98 = arith.cmpi sgt, %3, %97 : vector<2x1xi32>
    %99 = vector.shape_cast %98 : vector<2x1xi1> to vector<2x1xi1>
    %100 = vector.broadcast %99 : vector<2x1xi1> to vector<2x16xi1>
    %101 = arith.select %100, %96, %53 : vector<2x16xi1>, vector<2x16xf32>
    %102 = vector.shape_cast %98 : vector<2x1xi1> to vector<2x1xi1>
    %103 = vector.broadcast %102 : vector<2x1xi1> to vector<2x16xi1>
    %104 = arith.select %103, %94, %56 : vector<2x16xi1>, vector<2x16xf32>
    %cst_33 = arith.constant 0.000000e+00 : f32
    %105 = vector.shape_cast %98 : vector<2x1xi1> to vector<2x1xi1>
    %106 = vector.broadcast %105 : vector<2x1xi1> to vector<2x16xi1>
    %107 = vector.broadcast %cst_33 : f32 to vector<2x16xf32>
    %108 = arith.select %106, %96, %107 : vector<2x16xi1>, vector<2x16xf32>
    %c0_34 = arith.constant 0 : index
    %109 = arith.index_cast %66 : i32 to index
    %c0_35 = arith.constant 0 : index
    %c0_36 = arith.constant 0 : index
    %110 = vector.load %arg6[%c0_34, %109, %c0_35, %c0_36] : memref<1x8x2x16xf32, #tpu.memory_space<vmem>>, vector<1x1x2x16xf32>
    %111 = vector.shape_cast %110 : vector<1x1x2x16xf32> to vector<2x16xf32>
    %112 = vector.shape_cast %108 : vector<2x16xf32> to vector<1x1x2x16xf32>
    tpu.vector_store %arg6[%c0_34, %109, %c0_35, %c0_36], %112 {strides = array<i32>} : memref<1x8x2x16xf32, #tpu.memory_space<vmem>>, vector<1x1x2x16xf32>,
    %c2_i32_37 = arith.constant 2 : i32
    %113 = arith.muli %2, %c2_i32_37 : i32
    %114 = arith.addi %0, %113 : i32
    %c2_i32_38 = arith.constant 2 : i32
    %115 = arith.muli %114, %c2_i32_38 : i32
    %116 = arith.index_cast %115 : i32 to index
    %c0_39 = arith.constant 0 : index
    %117 = vector.load %arg9[%116, %c0_39] : memref<16x64xf32, #tpu.memory_space<vmem>>, vector<2x64xf32>
    %cst_40 = arith.constant dense<0.000000e+00> : vector<2x64xf32>
    %118 = tpu.matmul %101, %5, %cst_40 {dimension_numbers = #tpu.dot_dimension_numbers<[1], [0], [0], [1], [0, 0, 1, 1], [], []>} : vector<2x16xf32>, vector<16x64xf32>, vector<2x64xf32> -> vector<2x64xf32>
    %119 = arith.addf %117, %118 : vector<2x64xf32>
    %120 = vector.extract_strided_slice %119 {offsets = [0, 0], sizes = [2, 16], strides = [1, 1]} : vector<2x64xf32> to vector<2x16xf32>
    %121 = arith.negf %120 : vector<2x16xf32>
    %122 = math.exp %121 : vector<2x16xf32>
    %cst_41 = arith.constant 1.000000e+00 : f32
    %123 = vector.broadcast %cst_41 : f32 to vector<2x16xf32>
    %124 = arith.addf %123, %122 : vector<2x16xf32>
    %125 = arith.divf %123, %124 : vector<2x16xf32>
    %126 = vector.extract_strided_slice %119 {offsets = [0, 16], sizes = [2, 16], strides = [1, 1]} : vector<2x64xf32> to vector<2x16xf32>
    %127 = arith.negf %126 : vector<2x16xf32>
    %128 = math.exp %127 : vector<2x16xf32>
    %cst_42 = arith.constant 1.000000e+00 : f32
    %129 = vector.broadcast %cst_42 : f32 to vector<2x16xf32>
    %130 = arith.addf %129, %128 : vector<2x16xf32>
    %131 = arith.divf %129, %130 : vector<2x16xf32>
    %132 = vector.extract_strided_slice %119 {offsets = [0, 32], sizes = [2, 16], strides = [1, 1]} : vector<2x64xf32> to vector<2x16xf32>
    %133 = math.tanh %132 : vector<2x16xf32>
    %134 = vector.extract_strided_slice %119 {offsets = [0, 48], sizes = [2, 16], strides = [1, 1]} : vector<2x64xf32> to vector<2x16xf32>
    %135 = arith.negf %134 : vector<2x16xf32>
    %136 = math.exp %135 : vector<2x16xf32>
    %cst_43 = arith.constant 1.000000e+00 : f32
    %137 = vector.broadcast %cst_43 : f32 to vector<2x16xf32>
    %138 = arith.addf %137, %136 : vector<2x16xf32>
    %139 = arith.divf %137, %138 : vector<2x16xf32>
    %140 = arith.mulf %131, %104 : vector<2x16xf32>
    %141 = arith.mulf %125, %133 : vector<2x16xf32>
    %142 = arith.addf %140, %141 : vector<2x16xf32>
    %143 = math.tanh %142 : vector<2x16xf32>
    %144 = arith.mulf %139, %143 : vector<2x16xf32>
    %145 = vector.broadcast %114 : i32 to vector<2x1xi32>
    %146 = arith.cmpi sgt, %3, %145 : vector<2x1xi32>
    %147 = vector.shape_cast %146 : vector<2x1xi1> to vector<2x1xi1>
    %148 = vector.broadcast %147 : vector<2x1xi1> to vector<2x16xi1>
    %149 = arith.select %148, %144, %101 : vector<2x16xi1>, vector<2x16xf32>
    %150 = vector.shape_cast %146 : vector<2x1xi1> to vector<2x1xi1>
    %151 = vector.broadcast %150 : vector<2x1xi1> to vector<2x16xi1>
    %152 = arith.select %151, %142, %104 : vector<2x16xi1>, vector<2x16xf32>
    %cst_44 = arith.constant 0.000000e+00 : f32
    %153 = vector.shape_cast %146 : vector<2x1xi1> to vector<2x1xi1>
    %154 = vector.broadcast %153 : vector<2x1xi1> to vector<2x16xi1>
    %155 = vector.broadcast %cst_44 : f32 to vector<2x16xf32>
    %156 = arith.select %154, %144, %155 : vector<2x16xi1>, vector<2x16xf32>
    %c0_45 = arith.constant 0 : index
    %157 = arith.index_cast %114 : i32 to index
    %c0_46 = arith.constant 0 : index
    %c0_47 = arith.constant 0 : index
    %158 = vector.load %arg6[%c0_45, %157, %c0_46, %c0_47] : memref<1x8x2x16xf32, #tpu.memory_space<vmem>>, vector<1x1x2x16xf32>
    %159 = vector.shape_cast %158 : vector<1x1x2x16xf32> to vector<2x16xf32>
    %160 = vector.shape_cast %156 : vector<2x16xf32> to vector<1x1x2x16xf32>
    tpu.vector_store %arg6[%c0_45, %157, %c0_46, %c0_47], %160 {strides = array<i32>} : memref<1x8x2x16xf32, #tpu.memory_space<vmem>>, vector<1x1x2x16xf32>,
    %c3_i32 = arith.constant 3 : i32
    %161 = arith.muli %2, %c3_i32 : i32
    %162 = arith.addi %0, %161 : i32
    %c2_i32_48 = arith.constant 2 : i32
    %163 = arith.muli %162, %c2_i32_48 : i32
    %164 = arith.index_cast %163 : i32 to index
    %c0_49 = arith.constant 0 : index
    %165 = vector.load %arg9[%164, %c0_49] : memref<16x64xf32, #tpu.memory_space<vmem>>, vector<2x64xf32>
    %cst_50 = arith.constant dense<0.000000e+00> : vector<2x64xf32>
    %166 = tpu.matmul %149, %5, %cst_50 {dimension_numbers = #tpu.dot_dimension_numbers<[1], [0], [0], [1], [0, 0, 1, 1], [], []>} : vector<2x16xf32>, vector<16x64xf32>, vector<2x64xf32> -> vector<2x64xf32>
    %167 = arith.addf %165, %166 : vector<2x64xf32>
    %168 = vector.extract_strided_slice %167 {offsets = [0, 0], sizes = [2, 16], strides = [1, 1]} : vector<2x64xf32> to vector<2x16xf32>
    %169 = arith.negf %168 : vector<2x16xf32>
    %170 = math.exp %169 : vector<2x16xf32>
    %cst_51 = arith.constant 1.000000e+00 : f32
    %171 = vector.broadcast %cst_51 : f32 to vector<2x16xf32>
    %172 = arith.addf %171, %170 : vector<2x16xf32>
    %173 = arith.divf %171, %172 : vector<2x16xf32>
    %174 = vector.extract_strided_slice %167 {offsets = [0, 16], sizes = [2, 16], strides = [1, 1]} : vector<2x64xf32> to vector<2x16xf32>
    %175 = arith.negf %174 : vector<2x16xf32>
    %176 = math.exp %175 : vector<2x16xf32>
    %cst_52 = arith.constant 1.000000e+00 : f32
    %177 = vector.broadcast %cst_52 : f32 to vector<2x16xf32>
    %178 = arith.addf %177, %176 : vector<2x16xf32>
    %179 = arith.divf %177, %178 : vector<2x16xf32>
    %180 = vector.extract_strided_slice %167 {offsets = [0, 32], sizes = [2, 16], strides = [1, 1]} : vector<2x64xf32> to vector<2x16xf32>
    %181 = math.tanh %180 : vector<2x16xf32>
    %182 = vector.extract_strided_slice %167 {offsets = [0, 48], sizes = [2, 16], strides = [1, 1]} : vector<2x64xf32> to vector<2x16xf32>
    %183 = arith.negf %182 : vector<2x16xf32>
    %184 = math.exp %183 : vector<2x16xf32>
    %cst_53 = arith.constant 1.000000e+00 : f32
    %185 = vector.broadcast %cst_53 : f32 to vector<2x16xf32>
    %186 = arith.addf %185, %184 : vector<2x16xf32>
    %187 = arith.divf %185, %186 : vector<2x16xf32>
    %188 = arith.mulf %179, %152 : vector<2x16xf32>
    %189 = arith.mulf %173, %181 : vector<2x16xf32>
    %190 = arith.addf %188, %189 : vector<2x16xf32>
    %191 = math.tanh %190 : vector<2x16xf32>
    %192 = arith.mulf %187, %191 : vector<2x16xf32>
    %193 = vector.broadcast %162 : i32 to vector<2x1xi32>
    %194 = arith.cmpi sgt, %3, %193 : vector<2x1xi32>
    %195 = vector.shape_cast %194 : vector<2x1xi1> to vector<2x1xi1>
    %196 = vector.broadcast %195 : vector<2x1xi1> to vector<2x16xi1>
    %197 = arith.select %196, %192, %149 : vector<2x16xi1>, vector<2x16xf32>
    %198 = vector.shape_cast %194 : vector<2x1xi1> to vector<2x1xi1>
    %199 = vector.broadcast %198 : vector<2x1xi1> to vector<2x16xi1>
    %200 = arith.select %199, %190, %152 : vector<2x16xi1>, vector<2x16xf32>
    %cst_54 = arith.constant 0.000000e+00 : f32
    %201 = vector.shape_cast %194 : vector<2x1xi1> to vector<2x1xi1>
    %202 = vector.broadcast %201 : vector<2x1xi1> to vector<2x16xi1>
    %203 = vector.broadcast %cst_54 : f32 to vector<2x16xf32>
    %204 = arith.select %202, %192, %203 : vector<2x16xi1>, vector<2x16xf32>
    %c0_55 = arith.constant 0 : index
    %205 = arith.index_cast %162 : i32 to index
    %c0_56 = arith.constant 0 : index
    %c0_57 = arith.constant 0 : index
    %206 = vector.load %arg6[%c0_55, %205, %c0_56, %c0_57] : memref<1x8x2x16xf32, #tpu.memory_space<vmem>>, vector<1x1x2x16xf32>
    %207 = vector.shape_cast %206 : vector<1x1x2x16xf32> to vector<2x16xf32>
    %208 = vector.shape_cast %204 : vector<2x16xf32> to vector<1x1x2x16xf32>
    tpu.vector_store %arg6[%c0_55, %205, %c0_56, %c0_57], %208 {strides = array<i32>} : memref<1x8x2x16xf32, #tpu.memory_space<vmem>>, vector<1x1x2x16xf32>,
    %c4_i32 = arith.constant 4 : i32
    %209 = arith.muli %2, %c4_i32 : i32
    %210 = arith.addi %0, %209 : i32
    %c2_i32_58 = arith.constant 2 : i32
    %211 = arith.muli %210, %c2_i32_58 : i32
    %212 = arith.index_cast %211 : i32 to index
    %c0_59 = arith.constant 0 : index
    %213 = vector.load %arg9[%212, %c0_59] : memref<16x64xf32, #tpu.memory_space<vmem>>, vector<2x64xf32>
    %cst_60 = arith.constant dense<0.000000e+00> : vector<2x64xf32>
    %214 = tpu.matmul %197, %5, %cst_60 {dimension_numbers = #tpu.dot_dimension_numbers<[1], [0], [0], [1], [0, 0, 1, 1], [], []>} : vector<2x16xf32>, vector<16x64xf32>, vector<2x64xf32> -> vector<2x64xf32>
    %215 = arith.addf %213, %214 : vector<2x64xf32>
    %216 = vector.extract_strided_slice %215 {offsets = [0, 0], sizes = [2, 16], strides = [1, 1]} : vector<2x64xf32> to vector<2x16xf32>
    %217 = arith.negf %216 : vector<2x16xf32>
    %218 = math.exp %217 : vector<2x16xf32>
    %cst_61 = arith.constant 1.000000e+00 : f32
    %219 = vector.broadcast %cst_61 : f32 to vector<2x16xf32>
    %220 = arith.addf %219, %218 : vector<2x16xf32>
    %221 = arith.divf %219, %220 : vector<2x16xf32>
    %222 = vector.extract_strided_slice %215 {offsets = [0, 16], sizes = [2, 16], strides = [1, 1]} : vector<2x64xf32> to vector<2x16xf32>
    %223 = arith.negf %222 : vector<2x16xf32>
    %224 = math.exp %223 : vector<2x16xf32>
    %cst_62 = arith.constant 1.000000e+00 : f32
    %225 = vector.broadcast %cst_62 : f32 to vector<2x16xf32>
    %226 = arith.addf %225, %224 : vector<2x16xf32>
    %227 = arith.divf %225, %226 : vector<2x16xf32>
    %228 = vector.extract_strided_slice %215 {offsets = [0, 32], sizes = [2, 16], strides = [1, 1]} : vector<2x64xf32> to vector<2x16xf32>
    %229 = math.tanh %228 : vector<2x16xf32>
    %230 = vector.extract_strided_slice %215 {offsets = [0, 48], sizes = [2, 16], strides = [1, 1]} : vector<2x64xf32> to vector<2x16xf32>
    %231 = arith.negf %230 : vector<2x16xf32>
    %232 = math.exp %231 : vector<2x16xf32>
    %cst_63 = arith.constant 1.000000e+00 : f32
    %233 = vector.broadcast %cst_63 : f32 to vector<2x16xf32>
    %234 = arith.addf %233, %232 : vector<2x16xf32>
    %235 = arith.divf %233, %234 : vector<2x16xf32>
    %236 = arith.mulf %227, %200 : vector<2x16xf32>
    %237 = arith.mulf %221, %229 : vector<2x16xf32>
    %238 = arith.addf %236, %237 : vector<2x16xf32>
    %239 = math.tanh %238 : vector<2x16xf32>
    %240 = arith.mulf %235, %239 : vector<2x16xf32>
    %241 = vector.broadcast %210 : i32 to vector<2x1xi32>
    %242 = arith.cmpi sgt, %3, %241 : vector<2x1xi32>
    %243 = vector.shape_cast %242 : vector<2x1xi1> to vector<2x1xi1>
    %244 = vector.broadcast %243 : vector<2x1xi1> to vector<2x16xi1>
    %245 = arith.select %244, %240, %197 : vector<2x16xi1>, vector<2x16xf32>
    %246 = vector.shape_cast %242 : vector<2x1xi1> to vector<2x1xi1>
    %247 = vector.broadcast %246 : vector<2x1xi1> to vector<2x16xi1>
    %248 = arith.select %247, %238, %200 : vector<2x16xi1>, vector<2x16xf32>
    %cst_64 = arith.constant 0.000000e+00 : f32
    %249 = vector.shape_cast %242 : vector<2x1xi1> to vector<2x1xi1>
    %250 = vector.broadcast %249 : vector<2x1xi1> to vector<2x16xi1>
    %251 = vector.broadcast %cst_64 : f32 to vector<2x16xf32>
    %252 = arith.select %250, %240, %251 : vector<2x16xi1>, vector<2x16xf32>
    %c0_65 = arith.constant 0 : index
    %253 = arith.index_cast %210 : i32 to index
    %c0_66 = arith.constant 0 : index
    %c0_67 = arith.constant 0 : index
    %254 = vector.load %arg6[%c0_65, %253, %c0_66, %c0_67] : memref<1x8x2x16xf32, #tpu.memory_space<vmem>>, vector<1x1x2x16xf32>
    %255 = vector.shape_cast %254 : vector<1x1x2x16xf32> to vector<2x16xf32>
    %256 = vector.shape_cast %252 : vector<2x16xf32> to vector<1x1x2x16xf32>
    tpu.vector_store %arg6[%c0_65, %253, %c0_66, %c0_67], %256 {strides = array<i32>} : memref<1x8x2x16xf32, #tpu.memory_space<vmem>>, vector<1x1x2x16xf32>,
    %c5_i32 = arith.constant 5 : i32
    %257 = arith.muli %2, %c5_i32 : i32
    %258 = arith.addi %0, %257 : i32
    %c2_i32_68 = arith.constant 2 : i32
    %259 = arith.muli %258, %c2_i32_68 : i32
    %260 = arith.index_cast %259 : i32 to index
    %c0_69 = arith.constant 0 : index
    %261 = vector.load %arg9[%260, %c0_69] : memref<16x64xf32, #tpu.memory_space<vmem>>, vector<2x64xf32>
    %cst_70 = arith.constant dense<0.000000e+00> : vector<2x64xf32>
    %262 = tpu.matmul %245, %5, %cst_70 {dimension_numbers = #tpu.dot_dimension_numbers<[1], [0], [0], [1], [0, 0, 1, 1], [], []>} : vector<2x16xf32>, vector<16x64xf32>, vector<2x64xf32> -> vector<2x64xf32>
    %263 = arith.addf %261, %262 : vector<2x64xf32>
    %264 = vector.extract_strided_slice %263 {offsets = [0, 0], sizes = [2, 16], strides = [1, 1]} : vector<2x64xf32> to vector<2x16xf32>
    %265 = arith.negf %264 : vector<2x16xf32>
    %266 = math.exp %265 : vector<2x16xf32>
    %cst_71 = arith.constant 1.000000e+00 : f32
    %267 = vector.broadcast %cst_71 : f32 to vector<2x16xf32>
    %268 = arith.addf %267, %266 : vector<2x16xf32>
    %269 = arith.divf %267, %268 : vector<2x16xf32>
    %270 = vector.extract_strided_slice %263 {offsets = [0, 16], sizes = [2, 16], strides = [1, 1]} : vector<2x64xf32> to vector<2x16xf32>
    %271 = arith.negf %270 : vector<2x16xf32>
    %272 = math.exp %271 : vector<2x16xf32>
    %cst_72 = arith.constant 1.000000e+00 : f32
    %273 = vector.broadcast %cst_72 : f32 to vector<2x16xf32>
    %274 = arith.addf %273, %272 : vector<2x16xf32>
    %275 = arith.divf %273, %274 : vector<2x16xf32>
    %276 = vector.extract_strided_slice %263 {offsets = [0, 32], sizes = [2, 16], strides = [1, 1]} : vector<2x64xf32> to vector<2x16xf32>
    %277 = math.tanh %276 : vector<2x16xf32>
    %278 = vector.extract_strided_slice %263 {offsets = [0, 48], sizes = [2, 16], strides = [1, 1]} : vector<2x64xf32> to vector<2x16xf32>
    %279 = arith.negf %278 : vector<2x16xf32>
    %280 = math.exp %279 : vector<2x16xf32>
    %cst_73 = arith.constant 1.000000e+00 : f32
    %281 = vector.broadcast %cst_73 : f32 to vector<2x16xf32>
    %282 = arith.addf %281, %280 : vector<2x16xf32>
    %283 = arith.divf %281, %282 : vector<2x16xf32>
    %284 = arith.mulf %275, %248 : vector<2x16xf32>
    %285 = arith.mulf %269, %277 : vector<2x16xf32>
    %286 = arith.addf %284, %285 : vector<2x16xf32>
    %287 = math.tanh %286 : vector<2x16xf32>
    %288 = arith.mulf %283, %287 : vector<2x16xf32>
    %289 = vector.broadcast %258 : i32 to vector<2x1xi32>
    %290 = arith.cmpi sgt, %3, %289 : vector<2x1xi32>
    %291 = vector.shape_cast %290 : vector<2x1xi1> to vector<2x1xi1>
    %292 = vector.broadcast %291 : vector<2x1xi1> to vector<2x16xi1>
    %293 = arith.select %292, %288, %245 : vector<2x16xi1>, vector<2x16xf32>
    %294 = vector.shape_cast %290 : vector<2x1xi1> to vector<2x1xi1>
    %295 = vector.broadcast %294 : vector<2x1xi1> to vector<2x16xi1>
    %296 = arith.select %295, %286, %248 : vector<2x16xi1>, vector<2x16xf32>
    %cst_74 = arith.constant 0.000000e+00 : f32
    %297 = vector.shape_cast %290 : vector<2x1xi1> to vector<2x1xi1>
    %298 = vector.broadcast %297 : vector<2x1xi1> to vector<2x16xi1>
    %299 = vector.broadcast %cst_74 : f32 to vector<2x16xf32>
    %300 = arith.select %298, %288, %299 : vector<2x16xi1>, vector<2x16xf32>
    %c0_75 = arith.constant 0 : index
    %301 = arith.index_cast %258 : i32 to index
    %c0_76 = arith.constant 0 : index
    %c0_77 = arith.constant 0 : index
    %302 = vector.load %arg6[%c0_75, %301, %c0_76, %c0_77] : memref<1x8x2x16xf32, #tpu.memory_space<vmem>>, vector<1x1x2x16xf32>
    %303 = vector.shape_cast %302 : vector<1x1x2x16xf32> to vector<2x16xf32>
    %304 = vector.shape_cast %300 : vector<2x16xf32> to vector<1x1x2x16xf32>
    tpu.vector_store %arg6[%c0_75, %301, %c0_76, %c0_77], %304 {strides = array<i32>} : memref<1x8x2x16xf32, #tpu.memory_space<vmem>>, vector<1x1x2x16xf32>,
    %c6_i32 = arith.constant 6 : i32
    %305 = arith.muli %2, %c6_i32 : i32
    %306 = arith.addi %0, %305 : i32
    %c2_i32_78 = arith.constant 2 : i32
    %307 = arith.muli %306, %c2_i32_78 : i32
    %308 = arith.index_cast %307 : i32 to index
    %c0_79 = arith.constant 0 : index
    %309 = vector.load %arg9[%308, %c0_79] : memref<16x64xf32, #tpu.memory_space<vmem>>, vector<2x64xf32>
    %cst_80 = arith.constant dense<0.000000e+00> : vector<2x64xf32>
    %310 = tpu.matmul %293, %5, %cst_80 {dimension_numbers = #tpu.dot_dimension_numbers<[1], [0], [0], [1], [0, 0, 1, 1], [], []>} : vector<2x16xf32>, vector<16x64xf32>, vector<2x64xf32> -> vector<2x64xf32>
    %311 = arith.addf %309, %310 : vector<2x64xf32>
    %312 = vector.extract_strided_slice %311 {offsets = [0, 0], sizes = [2, 16], strides = [1, 1]} : vector<2x64xf32> to vector<2x16xf32>
    %313 = arith.negf %312 : vector<2x16xf32>
    %314 = math.exp %313 : vector<2x16xf32>
    %cst_81 = arith.constant 1.000000e+00 : f32
    %315 = vector.broadcast %cst_81 : f32 to vector<2x16xf32>
    %316 = arith.addf %315, %314 : vector<2x16xf32>
    %317 = arith.divf %315, %316 : vector<2x16xf32>
    %318 = vector.extract_strided_slice %311 {offsets = [0, 16], sizes = [2, 16], strides = [1, 1]} : vector<2x64xf32> to vector<2x16xf32>
    %319 = arith.negf %318 : vector<2x16xf32>
    %320 = math.exp %319 : vector<2x16xf32>
    %cst_82 = arith.constant 1.000000e+00 : f32
    %321 = vector.broadcast %cst_82 : f32 to vector<2x16xf32>
    %322 = arith.addf %321, %320 : vector<2x16xf32>
    %323 = arith.divf %321, %322 : vector<2x16xf32>
    %324 = vector.extract_strided_slice %311 {offsets = [0, 32], sizes = [2, 16], strides = [1, 1]} : vector<2x64xf32> to vector<2x16xf32>
    %325 = math.tanh %324 : vector<2x16xf32>
    %326 = vector.extract_strided_slice %311 {offsets = [0, 48], sizes = [2, 16], strides = [1, 1]} : vector<2x64xf32> to vector<2x16xf32>
    %327 = arith.negf %326 : vector<2x16xf32>
    %328 = math.exp %327 : vector<2x16xf32>
    %cst_83 = arith.constant 1.000000e+00 : f32
    %329 = vector.broadcast %cst_83 : f32 to vector<2x16xf32>
    %330 = arith.addf %329, %328 : vector<2x16xf32>
    %331 = arith.divf %329, %330 : vector<2x16xf32>
    %332 = arith.mulf %323, %296 : vector<2x16xf32>
    %333 = arith.mulf %317, %325 : vector<2x16xf32>
    %334 = arith.addf %332, %333 : vector<2x16xf32>
    %335 = math.tanh %334 : vector<2x16xf32>
    %336 = arith.mulf %331, %335 : vector<2x16xf32>
    %337 = vector.broadcast %306 : i32 to vector<2x1xi32>
    %338 = arith.cmpi sgt, %3, %337 : vector<2x1xi32>
    %339 = vector.shape_cast %338 : vector<2x1xi1> to vector<2x1xi1>
    %340 = vector.broadcast %339 : vector<2x1xi1> to vector<2x16xi1>
    %341 = arith.select %340, %336, %293 : vector<2x16xi1>, vector<2x16xf32>
    %342 = vector.shape_cast %338 : vector<2x1xi1> to vector<2x1xi1>
    %343 = vector.broadcast %342 : vector<2x1xi1> to vector<2x16xi1>
    %344 = arith.select %343, %334, %296 : vector<2x16xi1>, vector<2x16xf32>
    %cst_84 = arith.constant 0.000000e+00 : f32
    %345 = vector.shape_cast %338 : vector<2x1xi1> to vector<2x1xi1>
    %346 = vector.broadcast %345 : vector<2x1xi1> to vector<2x16xi1>
    %347 = vector.broadcast %cst_84 : f32 to vector<2x16xf32>
    %348 = arith.select %346, %336, %347 : vector<2x16xi1>, vector<2x16xf32>
    %c0_85 = arith.constant 0 : index
    %349 = arith.index_cast %306 : i32 to index
    %c0_86 = arith.constant 0 : index
    %c0_87 = arith.constant 0 : index
    %350 = vector.load %arg6[%c0_85, %349, %c0_86, %c0_87] : memref<1x8x2x16xf32, #tpu.memory_space<vmem>>, vector<1x1x2x16xf32>
    %351 = vector.shape_cast %350 : vector<1x1x2x16xf32> to vector<2x16xf32>
    %352 = vector.shape_cast %348 : vector<2x16xf32> to vector<1x1x2x16xf32>
    tpu.vector_store %arg6[%c0_85, %349, %c0_86, %c0_87], %352 {strides = array<i32>} : memref<1x8x2x16xf32, #tpu.memory_space<vmem>>, vector<1x1x2x16xf32>,
    %c7_i32_88 = arith.constant 7 : i32
    %353 = arith.muli %2, %c7_i32_88 : i32
    %354 = arith.addi %0, %353 : i32
    %c2_i32_89 = arith.constant 2 : i32
    %355 = arith.muli %354, %c2_i32_89 : i32
    %356 = arith.index_cast %355 : i32 to index
    %c0_90 = arith.constant 0 : index
    %357 = vector.load %arg9[%356, %c0_90] : memref<16x64xf32, #tpu.memory_space<vmem>>, vector<2x64xf32>
    %cst_91 = arith.constant dense<0.000000e+00> : vector<2x64xf32>
    %358 = tpu.matmul %341, %5, %cst_91 {dimension_numbers = #tpu.dot_dimension_numbers<[1], [0], [0], [1], [0, 0, 1, 1], [], []>} : vector<2x16xf32>, vector<16x64xf32>, vector<2x64xf32> -> vector<2x64xf32>
    %359 = arith.addf %357, %358 : vector<2x64xf32>
    %360 = vector.extract_strided_slice %359 {offsets = [0, 0], sizes = [2, 16], strides = [1, 1]} : vector<2x64xf32> to vector<2x16xf32>
    %361 = arith.negf %360 : vector<2x16xf32>
    %362 = math.exp %361 : vector<2x16xf32>
    %cst_92 = arith.constant 1.000000e+00 : f32
    %363 = vector.broadcast %cst_92 : f32 to vector<2x16xf32>
    %364 = arith.addf %363, %362 : vector<2x16xf32>
    %365 = arith.divf %363, %364 : vector<2x16xf32>
    %366 = vector.extract_strided_slice %359 {offsets = [0, 16], sizes = [2, 16], strides = [1, 1]} : vector<2x64xf32> to vector<2x16xf32>
    %367 = arith.negf %366 : vector<2x16xf32>
    %368 = math.exp %367 : vector<2x16xf32>
    %cst_93 = arith.constant 1.000000e+00 : f32
    %369 = vector.broadcast %cst_93 : f32 to vector<2x16xf32>
    %370 = arith.addf %369, %368 : vector<2x16xf32>
    %371 = arith.divf %369, %370 : vector<2x16xf32>
    %372 = vector.extract_strided_slice %359 {offsets = [0, 32], sizes = [2, 16], strides = [1, 1]} : vector<2x64xf32> to vector<2x16xf32>
    %373 = math.tanh %372 : vector<2x16xf32>
    %374 = vector.extract_strided_slice %359 {offsets = [0, 48], sizes = [2, 16], strides = [1, 1]} : vector<2x64xf32> to vector<2x16xf32>
    %375 = arith.negf %374 : vector<2x16xf32>
    %376 = math.exp %375 : vector<2x16xf32>
    %cst_94 = arith.constant 1.000000e+00 : f32
    %377 = vector.broadcast %cst_94 : f32 to vector<2x16xf32>
    %378 = arith.addf %377, %376 : vector<2x16xf32>
    %379 = arith.divf %377, %378 : vector<2x16xf32>
    %380 = arith.mulf %371, %344 : vector<2x16xf32>
    %381 = arith.mulf %365, %373 : vector<2x16xf32>
    %382 = arith.addf %380, %381 : vector<2x16xf32>
    %383 = math.tanh %382 : vector<2x16xf32>
    %384 = arith.mulf %379, %383 : vector<2x16xf32>
    %385 = vector.broadcast %354 : i32 to vector<2x1xi32>
    %386 = arith.cmpi sgt, %3, %385 : vector<2x1xi32>
    %387 = vector.shape_cast %386 : vector<2x1xi1> to vector<2x1xi1>
    %388 = vector.broadcast %387 : vector<2x1xi1> to vector<2x16xi1>
    %389 = arith.select %388, %384, %341 : vector<2x16xi1>, vector<2x16xf32>
    %390 = vector.shape_cast %386 : vector<2x1xi1> to vector<2x1xi1>
    %391 = vector.broadcast %390 : vector<2x1xi1> to vector<2x16xi1>
    %392 = arith.select %391, %382, %344 : vector<2x16xi1>, vector<2x16xf32>
    %cst_95 = arith.constant 0.000000e+00 : f32
    %393 = vector.shape_cast %386 : vector<2x1xi1> to vector<2x1xi1>
    %394 = vector.broadcast %393 : vector<2x1xi1> to vector<2x16xi1>
    %395 = vector.broadcast %cst_95 : f32 to vector<2x16xf32>
    %396 = arith.select %394, %384, %395 : vector<2x16xi1>, vector<2x16xf32>
    %c0_96 = arith.constant 0 : index
    %397 = arith.index_cast %354 : i32 to index
    %c0_97 = arith.constant 0 : index
    %c0_98 = arith.constant 0 : index
    %398 = vector.load %arg6[%c0_96, %397, %c0_97, %c0_98] : memref<1x8x2x16xf32, #tpu.memory_space<vmem>>, vector<1x1x2x16xf32>
    %399 = vector.shape_cast %398 : vector<1x1x2x16xf32> to vector<2x16xf32>
    %400 = vector.shape_cast %396 : vector<2x16xf32> to vector<1x1x2x16xf32>
    tpu.vector_store %arg6[%c0_96, %397, %c0_97, %c0_98], %400 {strides = array<i32>} : memref<1x8x2x16xf32, #tpu.memory_space<vmem>>, vector<1x1x2x16xf32>,
    %c8_i32 = arith.constant 8 : i32
    %c0_99 = arith.constant 0 : index
    %c0_100 = arith.constant 0 : index
    %c0_101 = arith.constant 0 : index
    %401 = vector.load %arg7[%c0_99, %c0_100, %c0_101] : memref<1x2x16xf32, #tpu.memory_space<vmem>>, vector<1x2x16xf32>
    %402 = vector.shape_cast %401 : vector<1x2x16xf32> to vector<2x16xf32>
    %403 = vector.shape_cast %389 : vector<2x16xf32> to vector<1x2x16xf32>
    tpu.vector_store %arg7[%c0_99, %c0_100, %c0_101], %403 {strides = array<i32>} : memref<1x2x16xf32, #tpu.memory_space<vmem>>, vector<1x2x16xf32>,
    %c0_102 = arith.constant 0 : index
    %c0_103 = arith.constant 0 : index
    %c0_104 = arith.constant 0 : index
    %404 = vector.load %arg8[%c0_102, %c0_103, %c0_104] : memref<1x2x16xf32, #tpu.memory_space<vmem>>, vector<1x2x16xf32>
    %405 = vector.shape_cast %404 : vector<1x2x16xf32> to vector<2x16xf32>
    %406 = vector.shape_cast %392 : vector<2x16xf32> to vector<1x2x16xf32>
    tpu.vector_store %arg8[%c0_102, %c0_103, %c0_104], %406 {strides = array<i32>} : memref<1x2x16xf32, #tpu.memory_space<vmem>>, vector<1x2x16xf32>,
    return
  }
  func.func @transform_0(%arg0: i32) -> (i32, i32) {
    %c0_i32 = arith.constant 0 : i32
    %c0_i32_0 = arith.constant 0 : i32
    %c0_i32_1 = arith.constant 0 : i32
    return %c0_i32, %c0_i32_0 : i32, i32
  }
  func.func @transform_1(%arg0: i32) -> (i32, i32) {
    %c0_i32 = arith.constant 0 : i32
    %c0_i32_0 = arith.constant 0 : i32
    %c0_i32_1 = arith.constant 0 : i32
    return %c0_i32, %c0_i32_0 : i32, i32
  }
  func.func @transform_2(%arg0: i32) -> (i32, i32, i32) {
    %c0_i32 = arith.constant 0 : i32
    %c0_i32_0 = arith.constant 0 : i32
    %c0_i32_1 = arith.constant 0 : i32
    return %arg0, %c0_i32, %c0_i32_0 : i32, i32, i32
  }
  func.func @transform_3(%arg0: i32) -> (i32, i32, i32) {
    %c0_i32 = arith.constant 0 : i32
    %c0_i32_0 = arith.constant 0 : i32
    %c0_i32_1 = arith.constant 0 : i32
    return %arg0, %c0_i32, %c0_i32_0 : i32, i32, i32
  }
  func.func @transform_4(%arg0: i32) -> (i32, i32, i32) {
    %c0_i32 = arith.constant 0 : i32
    %c0_i32_0 = arith.constant 0 : i32
    %c0_i32_1 = arith.constant 0 : i32
    return %arg0, %c0_i32, %c0_i32_0 : i32, i32, i32
  }
  func.func @transform_5(%arg0: i32) -> (i32, i32, i32, i32) {
    %c0_i32 = arith.constant 0 : i32
    %c0_i32_0 = arith.constant 0 : i32
    %c0_i32_1 = arith.constant 0 : i32
    %c0_i32_2 = arith.constant 0 : i32
    return %arg0, %c0_i32, %c0_i32_0, %c0_i32_1 : i32, i32, i32, i32
  }
  func.func @transform_6(%arg0: i32) -> (i32, i32, i32) {
    %c0_i32 = arith.constant 0 : i32
    %c0_i32_0 = arith.constant 0 : i32
    %c0_i32_1 = arith.constant 0 : i32
    return %arg0, %c0_i32, %c0_i32_0 : i32, i32, i32
  }
  func.func @transform_7(%arg0: i32) -> (i32, i32, i32) {
    %c0_i32 = arith.constant 0 : i32
    %c0_i32_0 = arith.constant 0 : i32
    %c0_i32_1 = arith.constant 0 : i32
    return %arg0, %c0_i32, %c0_i32_0 : i32, i32, i32
  }
}

</mosaic_0001>

<bundles_post_ra>
// kernel: encoder_rnn_forward.1
= control target key start
LH: loop header
LB: loop body
LE: loop exit
PB: predicated region body
PF: predicated region fallthrough
CT: control target
= control target key end

     0   :  { %s2119_s0 = inlined_call_operand.vmem [shape: s32[2,1], index: 0, kind: input, shape index: {}]   ;;  %s2120_s1 = inlined_call_operand.hbm [shape: f32[16,8], index: 1, kind: input, shape index: {}]   ;;  %s2121_s2 = inlined_call_operand.hbm [shape: f32[2,8,64], index: 2, kind: input, shape index: {}]   ;;  %s2122_s3 = inlined_call_operand.hbm [shape: f32[2,16,64], index: 3, kind: input, shape index: {}]   ;;  %s2123_s4 = inlined_call_operand.vmem [shape: f32[2,1,64], index: 4, kind: input, shape index: {}]   ;;  %s2124_s5 = inlined_call_operand.vmem [shape: f32[2,8,2,16], index: 5, kind: output, shape index: {0}]   ;;  %s2125_s6 = inlined_call_operand.vmem [shape: f32[2,2,16], index: 6, kind: output, shape index: {1}]   ;;  %s2126_s7 = inlined_call_operand.vmem [shape: f32[2,2,16], index: 7, kind: output, shape index: {2}]  }
   0x1   :  { %2130 = sst [smem:[#allocation10_spill]] %s2120_s1 }
   0x2   :  { %2131 = sst [smem:[#allocation11_spill]] %s2121_s2 }
   0x3   :  { %13 = vsyncpa [#allocation4], 0 }
   0x4   :  { %14 = vsyncpa [#allocation6], 0 }
   0x5   :  { %16 = vsyncpa [#allocation6 + $0x1], 0  ;;  %s1714_s24 = smov 0   ;;  %s1716_s25 = smov 0  }
   0x6   :  { %s1718_s26 = smov 0   ;;  %s1720_s27 = smov 0  }
   0x7 LB: > { %s1735_s28 = sadd.s32 1, %s1662_s27   ;;  %s71_s29 = sadd.s32 1, %s1658_s26  ;;  %s1662_s27 = sphi %s1720_s27, %s2143_s27   ;;  %s1658_s26 = sphi %s1718_s26, %s2142_s26   ;;  %s1654_s25 = sphi %s1716_s25, %s2141_s25   ;;  %s1650_s24 = sphi %s1714_s24, %s2140_s24  }
   0x8   : > { %s68_s30 = ssub.s32 %s1662_s27, %s1735_s28  ;;  %p78_p0 = scmp.ne.s32.totalorder %s1658_s26, %s1654_s25 }
   0x9   : > { %p69_p1 = scmp.eq.s32.totalorder %s68_s30, 0  ;;  %p79_p2 = scmp.eq.s32.totalorder %s1662_s27, 0 }
   0xa   : > { %p84_p3 = scmp.ne.s32.totalorder %s1654_s25, %s1650_s24  ;;  %p1422_p5 = scmp.lt.s32.totalorder %s1662_s27, 2 }
   0xb   : > { %s1746_s8 = scalar_select %p69_p1, %s1658_s26, %s71_s29  }
   0xc   : > { %p80_p4 = por %p79_p2, %p78_p0  ;;  %s255_s9 = sand.u32 1, %s1662_s27  }
   0xd   : > { %s257_s10 = sand.u32 1, %s1658_s26   ;;  %s1358_s12 = sshll.u32 %s1662_s27, 3 }
   0xe   : > { %s1357_s11 = sshll.u32 %s257_s10, 3  ;;  %s2132_s2 = sld [smem:[#allocation11_spill]] }
   0xf   : > { %s259_s16 = scalar_lea.vmem [#allocation5], %s1357_s11  ;;  %p1755_p6 = pnand %p1422_p5, %p80_p4 }
  0x10   : > { %s267_s17 = sshll.u32 %s259_s16, 4  ;;  %s1359_s20 = sshll.u32 %s257_s10, 4  ;;  %s268_s17 = int_to_ptr.vmem [resolvable:$true] %s267_s17 }
  0x11   : > { %s1760_s21 = sadd.s32 4294967295, %s1662_s27   ;;  %s1762_s22 = scalar_lea.sflag [#allocation6], %s255_s9 }
  0x12   : > { %p1538_p8 = pneg %p1755_p6 }
  0x14   : > { %s263_s15 = scalar_lea.hbm %s2132_s2, %s1358_s12  ;;  %s1541_s12 = scalar_lea.hbm %s2132_s2, 16 }
  0x15   : > { %s265_s18 = sshll.u32 %s263_s15, 4  ;;  %s266_s18 = int_to_ptr.hbm [resolvable:$true] %s265_s18 }
  0x16   : > { %s1534_s23 = sshra.s32 %s266_s18, 4  ;;  %s1535_s23 = int_to_ptr.hbm [resolvable:$true] %s1534_s23 }
  0x17   : > { %s1536_s29 = scalar_lea.hbm %s1535_s23, 8  ;;  %p1542_p11 = scmp.lt.s32.totalorder %s1535_s23, %s2132_s2 }
  0x18   : > { %p1537_p7 = scmp.ne.s32.totalorder %s1535_s23, %s1536_s29  ;;  %p1543_p12 = scmp.lt.s32.totalorder %s1541_s12, %s1536_s29 }
  0x1a   : > { %p1539_p9 = pnand %p1538_p8, %p1537_p7  ;;  %p1544_p13 = por %p1543_p12, %p1542_p11 }
  0x1c   : > { %p1540_p10 = pneg %p1539_p9 }
  0x1e   : > { %p1545_p0 = pnand %p1544_p13, %p1540_p10 }
  0x20   : > { %1548 = shalt.err (!%p1545_p0)
}
  0x21   : > { %1417 = dma.hbm_to_vmem [thread:$0]  (!%p1755_p6), %s266_s18, 128, %s268_s17, %s1762_s22  }
  0x22   : > { %p85_p1 = scmp.eq.s32.totalorder %s1760_s21, 0  ;;  %s278_s9 = scalar_lea.vmem [#allocation7], %s1359_s20 }
  0x23   : > { %s1779_s14 = sshll.u32 %s278_s9, 4  ;;  %p1354_p2 = scmp.ge.s32.totalorder %s1662_s27, 1  ;;  %s287_s14 = int_to_ptr.vmem [resolvable:$true] %s1779_s14 }
  0x24   : > { %p1787_p4 = por %p85_p1, %p84_p3  ;;  %p225_p5 = scmp.lt.s32.totalorder %s1662_s27, 3 }
  0x25   : > { %s2135_s1 = sld [smem:[#allocation10_spill]]  ;;  %s1664_s17 = smov [#allocation3]  }
  0x26   : > { %p1795_p7 = pnand %p1354_p2, %p225_p5  ;;  %s241_s24 = sshll.u32 %s1664_s17, 4  ;;  %s242_s24 = int_to_ptr.vmem [resolvable:$true] %s241_s24 }
  0x27   : > { %s1400_s18 = sshll.u32 %s1662_s27, 4  ;;  %s1665_s10 = smov 128  }
  0x28   : > { %p1410_p9 = pneg %p1795_p7  ;;  %s283_s12 = scalar_lea.hbm %s2122_s3, %s1400_s18 }
  0x29   : > { %s284_s13 = sshll.u32 %s283_s12, 4  ;;  %s1666_s9 = smov 8   ;;  %s285_s13 = int_to_ptr.hbm [resolvable:$true] %s284_s13 }
  0x2a   : > { %p1411_p3 = pnand %p1410_p9, %p85_p1  ;;  %s1594_s16 = sshra.s32 %s285_s13, 4  ;;  %s1595_s16 = int_to_ptr.hbm [resolvable:$true] %s1594_s16 }
  0x2b   : > { %s239_s29 = sshll.u32 %s2135_s1, 4  ;;  %s1596_s23 = scalar_lea.hbm %s1595_s16, 16  ;;  %s240_s29 = int_to_ptr.hbm [resolvable:$true] %s239_s29 }
  0x2c   : > { %1413 = dma.hbm_to_vmem [thread:$0]  (!%p1411_p3), %s240_s29, 256, %s242_s24, [#allocation4], %s1665_s10, %s1665_s10, %s1666_s9  }
  0x2d   : > { %p1597_p10 = scmp.ne.s32.totalorder %s1595_s16, %s1596_s23  ;;  %s1601_s1 = scalar_lea.hbm %s2122_s3, 32 }
  0x2e   : > { %p1602_p13 = scmp.lt.s32.totalorder %s1595_s16, %s2122_s3  ;;  %p1603_p0 = scmp.lt.s32.totalorder %s1601_s1, %s1596_s23 }
  0x2f   : > { %p1599_p11 = pnand %p1597_p10, %p1538_p8 }
  0x30   : > { %p1604_p2 = por %p1603_p0, %p1602_p13 }
  0x31   : > { %p1600_p12 = pneg %p1599_p11 }
  0x33   : > { %p1605_p5 = pnand %p1604_p2, %p1600_p12 }
  0x35   : > { %1608 = shalt.err (!%p1605_p5)
}
  0x36   : > { %1420 = dma.hbm_to_vmem [thread:$0]  (!%p1755_p6), %s285_s13, 256, %s287_s14, %s1762_s22, %s1665_s10, %s1665_s10, %s1666_s9  }
  0x37   : > { %304 = sbr.rel (%p1795_p7) target bundleno = 4725 (0x1275), region = 40 }
  0x3c   : > { %1641 = dma.done.wait (%p85_p1), [#allocation4], 256  }
  0x3d   : > { %1643 = vsyncadd (%p85_p1), [#allocation4], 4294967040  ;;  %s311_s1 = sand.u32 1, %s1760_s21   ;;  %s313_s2 = sand.u32 1, %s1654_s25  }
  0x3e   : > { %s1364_s29 = sshll.u32 %s313_s2, 3  ;;  %s312_s24 = scalar_lea.sflag [#allocation6], %s311_s1 }
  0x3f   : > { %s315_s18 = scalar_lea.vmem [#allocation5], %s1364_s29 }
  0x40   : > { %1645 = dma.done.wait (%p1787_p4), %s312_s24, 384  }
  0x41   : > { %1647 = vsyncadd (%p1787_p4), %s312_s24, 4294966912  ;;  %p373_p6 = scmp.lt.s32.totalorder %s1760_s21, 1  ;;  %s1365_s19 = sshll.u32 %s313_s2, 4  ;;  %vm402_vm0 = vcmask 64512   ;;  %v397_v0 = vld [vmem:[%s315_s18] sm:$0xff]  ;;  %v395_v1 = vld [vmem:[#allocation3] sm:$0xff] }
  0x42   : > { %424 = vmatpush.msra.mxu0 %v397_v0  ;;  %s325_s12 = scalar_lea.vmem [#allocation7], %s1365_s19  ;;  %v1667_v4 = vmov 0.0   ;;  %v396_v5 = vld [vmem:[#allocation3 + $0x8] sm:$0xff]  ;;  %vm432_vm1 = vcmask 523264   ;;  %s435_s15 = smul.u32 14, %s1760_s21  ;;  %v1670_v30 = vmov 0  }
  0x43   : > { %s1834_s22 = scalar_select %p373_p6, %s1760_s21, 1  ;;  %v394_v2 = vld [vmem:[%s325_s12 + $0x8] sm:$0xff]  ;;  %v393_v3 = vld [vmem:[%s325_s12] sm:$0xff]  ;;  %1371 = vmatmul.msk.f32.vlgmr.msra.gmra.mxu0 %vm402_vm0, %v395_v1  ;;  %1466 = vset.pattern.permute.xlu1 %v1670_v30  ;;  %vm515_vm8 = vcmask 123904   ;;  %vm438_vm9 = vcmask 130048  }
  0x44   : > { %456 = vmatpush.msra.mxu1 %v394_v2  ;;  %537 = vmatpush.msra.mxu2 %v394_v2  ;;  %s436_s13 = scalar_lea.vmem [#allocation2], %s435_s15  ;;  %s1668_s10 = smov 96   ;;  %v1859_v35 = vld [vmem:[%s2119_s0] sm:$0x3] }
  0x45   : > { %s375_s11 = scalar_lea.vmem %s2123_s4, %s1834_s22  ;;  %621 = vmatpush.msra.mxu3 %v394_v2  ;;  %957 = vmatpush.msrb.mxu0 %v394_v2  ;;  %s1669_s9 = smov 16  }
  0x46   : > { %457 = vmatpush.msra.mxu1 %v393_v3  ;;  %538 = vmatpush.msra.mxu2 %v393_v3  ;;  %v1469_v6 = vld [vmem:[%s375_s11] ss:$0 sm:$0xff]  ;;  %s1854_s16 = smul.u32 7, %s1760_s21  ;;  %s1671_s27 = smov 32  }
  0x47   : > { %458 = vmatmul.f32.vlgmr.msra.gmra.mxu1 %v1667_v4  ;;  %622 = vmatpush.msra.mxu3 %v393_v3  ;;  %s1672_s20 = smov 80   ;;  %s1401_s1 = sshll.u32 %s1834_s22, 4 }
  0x48   : > { %705 = vmatpush.msrb.mxu1 %v394_v2  ;;  %789 = vmatpush.msrb.mxu2 %v394_v2  ;;  %v500_v36 = vstv %s1854_s16  ;;  %s1871_s24 = scalar_lea.vmem %s2124_s5, %s1401_s1  ;;  %s1370_s19 = sshll.u32 %s1760_s21, 1 }
  0x49   : > { %873 = vmatpush.msrb.mxu3 %v394_v2  ;;  %958 = vmatpush.msrb.mxu0 %v393_v3  ;;  %vm501_vm6 = vcmp.gt.s32.totalorder %v1859_v35, %v500_v36  ;;  %s514_s18 = scalar_lea.vmem %s1871_s24, %s435_s15  ;;  %s1879_s14 = ssub.s32 1, %s1370_s19 }
  0x4a   : > { %706 = vmatpush.msrb.mxu1 %v393_v3  ;;  %790 = vmatpush.msrb.mxu2 %v393_v3  ;;  %v502_v37 = vsel %vm501_vm6, 1, %v1670_v30  ;;  %s1883_s30 = sadd.s32 %s1879_s14, %s1854_s16  ;;  %s1378_s21 = sshll.u32 %s1879_s14, 1 }
  0x4b   : > { %874 = vmatpush.msrb.mxu3 %v393_v3  ;;  %1372 = vmatmul.msk.f32.gmra.mxu0 %vm402_vm0, %v396_v5  ;;  %s1375_s11 = sshll.u32 %s1883_s30, 1  ;;  %v581_v50 = vstv %s1883_s30  ;;  %s1908_s15 = sadd.s32 %s1378_s21, %s1854_s16 }
  0x4c   : > { %1041 = vmatpush.msra.mxu1 %v394_v2  ;;  %1467 = vset.pattern.permute.xlu2 %v1670_v30  ;;  %s519_s12 = scalar_lea.vmem [#allocation2], %s1375_s11  ;;  %vm582_vm10 = vcmp.gt.s32.totalorder %v1859_v35, %v581_v50  ;;  %s681_s17 = smul.u32 3, %s1879_s14 }
  0x4d   : > { %1468 = vset.pattern.permute.xlu0 %v1670_v30  ;;  %v583_v51 = vsel %vm582_vm10, 1, %v1670_v30 }
  0x4e   : > { %1042 = vmatpush.msra.mxu1 %v393_v3  ;;  %s1933_s1 = sadd.s32 %s681_s17, %s1854_s16 }
  0x4f   : > { %s1382_s2 = sshll.u32 %s1933_s1, 1  ;;  %v749_v50 = vstv %s1933_s1 }
  0x50   : > { %s684_s29 = scalar_lea.vmem [#allocation2], %s1382_s2  ;;  %vm750_vm6 = vcmp.gt.s32.totalorder %v1859_v35, %v749_v50 }
  0xc0   : > { %v426_v7 = vpop.f32.mrf.mxu0 }
  0xc1   : > { %v427_v8 = vadd.f32 %v1469_v6, %v426_v7 }
  0xc3   : > { %433 = vst.msk [vmem:[#allocation2] sm:$0xff] %vm432_vm1, %v427_v8 }
  0xc4   : > { %v459_v11 = vpop.f32.mrf.mxu1 }
  0xc8   : > { %v429_v9 = vpop.f32.mrf.mxu0 }
  0xc9   : > { %v430_v10 = vadd.f32 %v1469_v6, %v429_v9 }
  0xcb   : > { %434 = vst.msk [vmem:[#allocation2 + $0x8] sm:$0xff] %vm432_vm1, %v430_v10 }
  0xd2   : > { %v437_v12 = vld [vmem:[%s436_s13] sm:$0x3]  ;;  %s1379_s13 = sshll.u32 %s1908_s15, 1 }
  0xd3   : > { %v462_v13 = vadd.f32 %v459_v11, %v437_v12  ;;  %v520_v43 = vld [vmem:[%s519_s12] sm:$0x3]  ;;  %s600_s23 = scalar_lea.vmem [#allocation2], %s1379_s13 }
  0xd4   : > { %v601_v10 = vld [vmem:[%s600_s23] sm:$0x3]  ;;  %s849_s23 = smul.u32 5, %s1879_s14 }
  0xd5   : > { %1470 = vtanh.f32 %v462_v13  ;;  %v1373_v15 = vmul.f32 -1.442695, %v462_v13 }
  0xd6   : > { %s1983_s17 = sadd.s32 %s849_s23, %s1854_s16 }
  0xd7   : > { %1472 = vpow2.f32 %v1373_v15 }
  0xdb   : > { %v1471_v14 = vpop.eup %1470 }
  0xdc   : > { %485 = vrot.lane.b32.xlu0 %v1471_v14, %s1668_s10  ;;  %v665_v14 = vstv %s1908_s15 }
  0xdd   : > { %v1473_v16 = vpop.eup %1472  ;;  %vm666_vm0 = vcmp.gt.s32.totalorder %v1859_v35, %v665_v14 }
  0xde   : > { %v466_v17 = vadd.f32 1.0, %v1473_v16  ;;  %v667_v15 = vsel %vm666_vm0, 1, %v1670_v30 }
  0xe0   : > { %1474 = vrcp.f32 %v466_v17  ;;  %v478_v23 = vand.u32 2147483648, %v466_v17  ;;  %vm472_vm3 = vweird.f32 %v466_v17  ;;  %v476_v24 = vand.u32 2147483647, %v466_v17 }
  0xe2   : > { %v479_v26 = vor.u32 1.1754944e-38, %v478_v23  ;;  %vm477_vm5 = vcmp.eq.f32.partialorder %v476_v24, 8.507059e+37 }
  0xe6   : > { %v1475_v18 = vpop.eup %1474 }
  0xe7   : > { %v468_v19 = vmul.f32 %v1475_v18, %v466_v17  ;;  %vm473_vm2 = vweird.f32 %v1475_v18 }
  0xe8   : > { %vm474_vm4 = vmor %vm472_vm3, %vm473_vm2 }
  0xe9   : > { %v469_v20 = vsub.f32 1.0, %v468_v19 }
  0xeb   : > { %v470_v21 = vmul.f32 %v1475_v18, %v469_v20 }
  0xed   : > { %v471_v22 = vadd.f32 %v1475_v18, %v470_v21 }
  0xef   : > { %v475_v25 = vsel %vm474_vm4, %v1475_v18, %v471_v22 }
  0xf0   : > { %v480_v28 = vsel %vm477_vm5, %v479_v26, %v475_v25 }
  0xf1   : > { %v483_v31 = vmul.f32 0.0, %v480_v28 }
 0x14e   : > { %v486_v27 = vpop.permute.xlu0 %485 }
 0x14f   : > { %v488_v29 = vmul.f32 %v486_v27, %v480_v28 }
 0x151   : > { %490 = vrot.lane.b32.xlu0 %v488_v29, %s1669_s9 }
 0x1c3   : > { %v491_v32 = vpop.permute.xlu0 %490 }
 0x1c4   : > { %v1850_v33 = vadd.f32 %v491_v32, %v483_v31 }
 0x1c6   : > { %1476 = vtanh.f32 %v1850_v33 }
 0x1cc   : > { %v1477_v34 = vpop.eup %1476 }
 0x1cd   : > { %496 = vrot.lane.b32.xlu1 %v1477_v34, %s1671_s27 }
 0x1d5   : > { %504 = vperm.xlu1 %1466, %v502_v37  }
 0x23f   : > { %v497_v38 = vpop.permute.xlu1 %496 }
 0x240   : > { %v499_v39 = vmul.f32 %v497_v38, %v480_v28 }
 0x247   : > { %v505_v40 = vpop.permute.xlu1 %504 }
 0x248   : > { %vm506_vm7 = vcmp.eq.s32.totalorder %v505_v40, 1 }
 0x249   : > { %v507_v41 = vsel %vm506_vm7, %v499_v39, 0.0  ;;  %v508_v0 = vsel %vm506_vm7, %v1850_v33, 0.0 }
 0x24a   : > { %510 = vrot.lane.b32.xlu2 %v507_v41, %s1672_s20 }
 0x2a4   : > { %v511_v42 = vpop.permute.xlu2 %510 }
 0x2a5   : > { %516 = vst.msk [vmem:[%s514_s18] sm:$0x3] %vm515_vm8, %v511_v42  ;;  %1376 = vmatmul.msk.f32.vlgmr.msra.gmra.mxu2 %vm438_vm9, %v511_v42  ;;  %s1385_s18 = sshll.u32 %s1879_s14, 2 }
 0x2a6   : > { %s1943_s19 = sadd.s32 %s1385_s18, %s1854_s16 }
 0x2a7   : > { %s2129_s12 = sshll.u32 %s1943_s19, 1 }
 0x2a8   : > { %s768_s21 = scalar_lea.vmem [#allocation2], %s2129_s12 }
 0x2a9   : > { %v769_v14 = vld [vmem:[%s768_s21] sm:$0x3]  ;;  %s933_s21 = smul.u32 6, %s1879_s14 }
 0x2ab   : > { %s2008_s23 = sadd.s32 %s933_s21, %s1854_s16 }
 0x2ac   : > { %s2139_s15 = sshll.u32 %s2008_s23, 1 }
 0x328   : > { %v540_v44 = vpop.f32.mrf.mxu2 }
 0x329   : > { %v543_v45 = vadd.f32 %v540_v44, %v520_v43  ;;  %v685_v43 = vld [vmem:[%s684_s29] sm:$0x3]  ;;  %s2127_s29 = sshll.u32 %s1983_s17, 1 }
 0x32a   : > { %s852_s18 = scalar_lea.vmem [#allocation2], %s2127_s29 }
 0x32b   : > { %1478 = vtanh.f32 %v543_v45  ;;  %v1377_v47 = vmul.f32 -1.442695, %v543_v45 }
 0x32d   : > { %1480 = vpow2.f32 %v1377_v47 }
 0x331   : > { %v1479_v46 = vpop.eup %1478 }
 0x332   : > { %566 = vrot.lane.b32.xlu2 %v1479_v46, %s1668_s10 }
 0x333   : > { %v1481_v48 = vpop.eup %1480 }
 0x334   : > { %v547_v49 = vadd.f32 1.0, %v1481_v48 }
 0x336   : > { %1482 = vrcp.f32 %v547_v49  ;;  %v559_v57 = vand.u32 2147483648, %v547_v49  ;;  %vm553_vm12 = vweird.f32 %v547_v49  ;;  %v557_v58 = vand.u32 2147483647, %v547_v49 }
 0x338   : > { %v560_v60 = vor.u32 1.1754944e-38, %v559_v57  ;;  %vm558_vm14 = vcmp.eq.f32.partialorder %v557_v58, 8.507059e+37 }
 0x33a   : > { %585 = vperm.xlu2 %1467, %v583_v51   ;;  %v751_v51 = vsel %vm750_vm6, 1, %v1670_v30 }
 0x33c   : > { %v1483_v52 = vpop.eup %1482 }
 0x33d   : > { %v549_v53 = vmul.f32 %v1483_v52, %v547_v49  ;;  %vm554_vm11 = vweird.f32 %v1483_v52 }
 0x33e   : > { %vm555_vm13 = vmor %vm553_vm12, %vm554_vm11 }
 0x33f   : > { %v550_v54 = vsub.f32 1.0, %v549_v53 }
 0x341   : > { %v551_v55 = vmul.f32 %v1483_v52, %v550_v54 }
 0x343   : > { %v552_v56 = vadd.f32 %v1483_v52, %v551_v55 }
 0x345   : > { %v556_v59 = vsel %vm555_vm13, %v1483_v52, %v552_v56  ;;  %v833_v52 = vstv %s1943_s19 }
 0x346   : > { %v561_v62 = vsel %vm558_vm14, %v560_v60, %v556_v59  ;;  %vm834_vm7 = vcmp.gt.s32.totalorder %v1859_v35, %v833_v52 }
 0x347   : > { %v564_v1 = vmul.f32 %v561_v62, %v508_v0  ;;  %v835_v54 = vsel %vm834_vm7, 1, %v1670_v30 }
 0x38c   : > { %v567_v61 = vpop.permute.xlu2 %566 }
 0x38d   : > { %v569_v63 = vmul.f32 %v567_v61, %v561_v62 }
 0x38f   : > { %571 = vrot.lane.b32.xlu0 %v569_v63, %s1669_s9 }
 0x394   : > { %v1896_v5 = vpop.permute.xlu2 %585 }
 0x395   : > { %vm587_vm15 = vcmp.eq.s32.totalorder %v1896_v5, 1 }
 0x401   : > { %v572_v2 = vpop.permute.xlu0 %571 }
 0x402   : > { %v574_v3 = vadd.f32 %v572_v2, %v564_v1 }
 0x404   : > { %1484 = vtanh.f32 %v574_v3  ;;  %v589_v32 = vsel %vm587_vm15, %v574_v3, %v508_v0 }
 0x40a   : > { %v1485_v4 = vpop.eup %1484 }
 0x40b   : > { %577 = vrot.lane.b32.xlu1 %v1485_v4, %s1671_s27 }
 0x47d   : > { %v578_v6 = vpop.permute.xlu1 %577 }
 0x47e   : > { %v1898_v7 = vmul.f32 %v578_v6, %v561_v62 }
 0x480   : > { %v588_v8 = vsel %vm587_vm15, %v1898_v7, %v507_v41 }
 0x481   : > { %603 = vrot.lane.b32.xlu0 %v588_v8, %s1672_s20 }
 0x4f3   : > { %v604_v9 = vpop.permute.xlu0 %603 }
 0x4f4   : > { %1380 = vmatmul.msk.f32.vlgmr.msra.gmra.mxu3 %vm438_vm9, %v604_v9 }
 0x577   : > { %v624_v11 = vpop.f32.mrf.mxu3 }
 0x578   : > { %v627_v12 = vadd.f32 %v624_v11, %v601_v10 }
 0x57a   : > { %1486 = vtanh.f32 %v627_v12  ;;  %v1381_v16 = vmul.f32 -1.442695, %v627_v12 }
 0x57c   : > { %1488 = vpow2.f32 %v1381_v16 }
 0x580   : > { %v1487_v13 = vpop.eup %1486 }
 0x581   : > { %650 = vrot.lane.b32.xlu1 %v1487_v13, %s1668_s10 }
 0x582   : > { %v1489_v17 = vpop.eup %1488 }
 0x583   : > { %v631_v18 = vadd.f32 1.0, %v1489_v17 }
 0x585   : > { %1490 = vrcp.f32 %v631_v18  ;;  %v643_v24 = vand.u32 2147483648, %v631_v18  ;;  %vm637_vm2 = vweird.f32 %v631_v18  ;;  %v641_v25 = vand.u32 2147483647, %v631_v18 }
 0x587   : > { %v644_v27 = vor.u32 1.1754944e-38, %v643_v24  ;;  %vm642_vm4 = vcmp.eq.f32.partialorder %v641_v25, 8.507059e+37 }
 0x589   : > { %669 = vperm.xlu1 %1466, %v667_v15  }
 0x58b   : > { %v1491_v19 = vpop.eup %1490 }
 0x58c   : > { %v633_v20 = vmul.f32 %v1491_v19, %v631_v18  ;;  %vm638_vm1 = vweird.f32 %v1491_v19 }
 0x58d   : > { %vm639_vm3 = vmor %vm637_vm2, %vm638_vm1 }
 0x58e   : > { %v634_v21 = vsub.f32 1.0, %v633_v20 }
 0x590   : > { %v635_v22 = vmul.f32 %v1491_v19, %v634_v21 }
 0x592   : > { %v636_v23 = vadd.f32 %v1491_v19, %v635_v22 }
 0x594   : > { %v640_v26 = vsel %vm639_vm3, %v1491_v19, %v636_v23 }
 0x595   : > { %v645_v29 = vsel %vm642_vm4, %v644_v27, %v640_v26 }
 0x596   : > { %v648_v33 = vmul.f32 %v645_v29, %v589_v32 }
 0x5f3   : > { %v651_v28 = vpop.permute.xlu1 %650 }
 0x5f4   : > { %v653_v31 = vmul.f32 %v651_v28, %v645_v29 }
 0x5f6   : > { %655 = vrot.lane.b32.xlu2 %v653_v31, %s1669_s9 }
 0x5fb   : > { %v1921_v38 = vpop.permute.xlu1 %669 }
 0x5fc   : > { %vm671_vm5 = vcmp.eq.s32.totalorder %v1921_v38, 1 }
 0x650   : > { %v656_v34 = vpop.permute.xlu2 %655 }
 0x651   : > { %v658_v36 = vadd.f32 %v656_v34, %v648_v33 }
 0x653   : > { %1492 = vtanh.f32 %v658_v36  ;;  %v673_v2 = vsel %vm671_vm5, %v658_v36, %v589_v32 }
 0x659   : > { %v1493_v37 = vpop.eup %1492 }
 0x65a   : > { %661 = vrot.lane.b32.xlu0 %v1493_v37, %s1671_s27 }
 0x6cc   : > { %v662_v39 = vpop.permute.xlu0 %661 }
 0x6cd   : > { %v1923_v40 = vmul.f32 %v662_v39, %v645_v29 }
 0x6cf   : > { %v672_v41 = vsel %vm671_vm5, %v1923_v40, %v588_v8 }
 0x6d0   : > { %687 = vrot.lane.b32.xlu2 %v672_v41, %s1672_s20 }
 0x72a   : > { %v688_v42 = vpop.permute.xlu2 %687 }
 0x72b   : > { %1383 = vmatmul.msk.f32.vlgmr.msrb.gmra.mxu1 %vm438_vm9, %v688_v42 }
 0x7a8   : > { %v708_v44 = vpop.f32.mrf.mxu1 }
 0x7a9   : > { %v711_v45 = vadd.f32 %v708_v44, %v685_v43 }
 0x7ab   : > { %1494 = vtanh.f32 %v711_v45  ;;  %v1384_v47 = vmul.f32 -1.442695, %v711_v45 }
 0x7ad   : > { %1496 = vpow2.f32 %v1384_v47  ;;  %v853_v47 = vld [vmem:[%s852_s18] sm:$0x3]  ;;  %s2128_s18 = sshll.u32 %s2008_s23, 1 }
 0x7ae   : > { %s936_s29 = scalar_lea.vmem [#allocation2], %s2128_s18 }
 0x7b1   : > { %v1495_v46 = vpop.eup %1494 }
 0x7b2   : > { %734 = vrot.lane.b32.xlu0 %v1495_v46, %s1668_s10 }
 0x7b3   : > { %v1497_v48 = vpop.eup %1496 }
 0x7b4   : > { %v715_v49 = vadd.f32 1.0, %v1497_v48 }
 0x7b6   : > { %1498 = vrcp.f32 %v715_v49  ;;  %v727_v59 = vand.u32 2147483648, %v715_v49  ;;  %vm721_vm11 = vweird.f32 %v715_v49  ;;  %v725_v60 = vand.u32 2147483647, %v715_v49 }
 0x7b8   : > { %v728_v62 = vor.u32 1.1754944e-38, %v727_v59  ;;  %vm726_vm13 = vcmp.eq.f32.partialorder %v725_v60, 8.507059e+37 }
 0x7ba   : > { %753 = vperm.xlu0 %1468, %v751_v51   ;;  %v917_v51 = vstv %s1983_s17 }
 0x7bb   : > { %vm918_vm6 = vcmp.gt.s32.totalorder %v1859_v35, %v917_v51 }
 0x7bc   : > { %v1499_v53 = vpop.eup %1498  ;;  %v919_v52 = vsel %vm918_vm6, 1, %v1670_v30 }
 0x7bd   : > { %v717_v55 = vmul.f32 %v1499_v53, %v715_v49  ;;  %vm722_vm10 = vweird.f32 %v1499_v53 }
 0x7be   : > { %vm723_vm12 = vmor %vm721_vm11, %vm722_vm10 }
 0x7bf   : > { %v718_v56 = vsub.f32 1.0, %v717_v55 }
 0x7c1   : > { %v719_v57 = vmul.f32 %v1499_v53, %v718_v56 }
 0x7c2   : > { %837 = vperm.xlu0 %1468, %v835_v54  }
 0x7c3   : > { %v720_v58 = vadd.f32 %v1499_v53, %v719_v57 }
 0x7c5   : > { %v724_v61 = vsel %vm723_vm12, %v1499_v53, %v720_v58 }
 0x7c6   : > { %v729_v0 = vsel %vm726_vm13, %v728_v62, %v724_v61 }
 0x7c7   : > { %v732_v3 = vmul.f32 %v729_v0, %v673_v2 }
 0x824   : > { %v735_v63 = vpop.permute.xlu0 %734 }
 0x825   : > { %v737_v1 = vmul.f32 %v735_v63, %v729_v0 }
 0x827   : > { %739 = vrot.lane.b32.xlu1 %v737_v1, %s1669_s9 }
 0x82c   : > { %v1953_v9 = vpop.permute.xlu0 %753 }
 0x82d   : > { %vm755_vm14 = vcmp.eq.s32.totalorder %v1953_v9, 1 }
 0x834   : > { %v1971_v42 = vpop.permute.xlu0 %837 }
 0x835   : > { %vm839_vm4 = vcmp.eq.s32.totalorder %v1971_v42, 1  ;;  %v674_v42 = vsel %vm671_vm5, %v1923_v40, 0.0 }
 0x899   : > { %v740_v4 = vpop.permute.xlu1 %739 }
 0x89a   : > { %v742_v6 = vadd.f32 %v740_v4, %v732_v3 }
 0x89c   : > { %1500 = vtanh.f32 %v742_v6  ;;  %v757_v34 = vsel %vm755_vm14, %v742_v6, %v673_v2 }
 0x8a2   : > { %v1501_v8 = vpop.eup %1500 }
 0x8a3   : > { %745 = vrot.lane.b32.xlu2 %v1501_v8, %s1671_s27 }
 0x8fd   : > { %v746_v10 = vpop.permute.xlu2 %745 }
 0x8fe   : > { %v1955_v11 = vmul.f32 %v746_v10, %v729_v0 }
 0x900   : > { %v756_v12 = vsel %vm755_vm14, %v1955_v11, %v672_v41 }
 0x901   : > { %771 = vrot.lane.b32.xlu1 %v756_v12, %s1672_s20 }
 0x973   : > { %v772_v13 = vpop.permute.xlu1 %771 }
 0x974   : > { %1387 = vmatmul.msk.f32.vlgmr.msrb.gmra.mxu2 %vm438_vm9, %v772_v13 }
 0x9f7   : > { %v792_v15 = vpop.f32.mrf.mxu2 }
 0x9f8   : > { %v795_v16 = vadd.f32 %v792_v15, %v769_v14 }
 0x9fa   : > { %1502 = vtanh.f32 %v795_v16  ;;  %v1388_v18 = vmul.f32 -1.442695, %v795_v16 }
 0x9fc   : > { %1504 = vpow2.f32 %v1388_v18  ;;  %v937_v18 = vld [vmem:[%s936_s29] sm:$0x3]  ;;  %s1017_s29 = smul.u32 7, %s1879_s14  ;;  %s2137_s14 = sshll.u32 %s1943_s19, 1 }
 0x9fd   : > { %s847_s30 = scalar_lea.vmem %s1871_s24, %s2137_s14 }
 0x9fe   : > { %s2029_s21 = sadd.s32 %s1017_s29, %s1854_s16  ;;  %s679_s16 = scalar_lea.vmem %s1871_s24, %s1379_s13 }
 0x9ff   : > { %s1395_s18 = sshll.u32 %s2029_s21, 1  ;;  %s1015_s13 = scalar_lea.vmem %s1871_s24, %s2139_s15 }
 0xa00   : > { %v1503_v17 = vpop.eup %1502  ;;  %s1020_s12 = scalar_lea.vmem [#allocation2], %s1395_s18 }
 0xa01   : > { %818 = vrot.lane.b32.xlu2 %v1503_v17, %s1668_s10 }
 0xa02   : > { %v1505_v19 = vpop.eup %1504 }
 0xa03   : > { %v799_v20 = vadd.f32 1.0, %v1505_v19 }
 0xa05   : > { %1506 = vrcp.f32 %v799_v20  ;;  %v811_v26 = vand.u32 2147483648, %v799_v20  ;;  %vm805_vm1 = vweird.f32 %v799_v20  ;;  %v809_v27 = vand.u32 2147483647, %v799_v20 }
 0xa07   : > { %v812_v29 = vor.u32 1.1754944e-38, %v811_v26  ;;  %vm810_vm3 = vcmp.eq.f32.partialorder %v809_v27, 8.507059e+37 }
 0xa0b   : > { %v1507_v21 = vpop.eup %1506 }
 0xa0c   : > { %v801_v22 = vmul.f32 %v1507_v21, %v799_v20  ;;  %vm806_vm0 = vweird.f32 %v1507_v21 }
 0xa0d   : > { %vm807_vm2 = vmor %vm805_vm1, %vm806_vm0 }
 0xa0e   : > { %v802_v23 = vsub.f32 1.0, %v801_v22  ;;  %v1001_v22 = vstv %s2008_s23 }
 0xa0f   : > { %vm1002_vm0 = vcmp.gt.s32.totalorder %v1859_v35, %v1001_v22 }
 0xa10   : > { %v803_v24 = vmul.f32 %v1507_v21, %v802_v23  ;;  %v1003_v23 = vsel %vm1002_vm0, 1, %v1670_v30 }
 0xa12   : > { %v804_v25 = vadd.f32 %v1507_v21, %v803_v24 }
 0xa14   : > { %v808_v28 = vsel %vm807_vm2, %v1507_v21, %v804_v25 }
 0xa15   : > { %v813_v32 = vsel %vm810_vm3, %v812_v29, %v808_v28 }
 0xa16   : > { %v816_v36 = vmul.f32 %v813_v32, %v757_v34 }
 0xa5b   : > { %v819_v31 = vpop.permute.xlu2 %818 }
 0xa5c   : > { %v821_v33 = vmul.f32 %v819_v31, %v813_v32 }
 0xa5e   : > { %823 = vrot.lane.b32.xlu1 %v821_v33, %s1669_s9 }
 0xad0   : > { %v824_v37 = vpop.permute.xlu1 %823 }
 0xad1   : > { %v826_v39 = vadd.f32 %v824_v37, %v816_v36 }
 0xad3   : > { %1508 = vtanh.f32 %v826_v39  ;;  %v841_v4 = vsel %vm839_vm4, %v826_v39, %v757_v34 }
 0xad9   : > { %v1509_v41 = vpop.eup %1508 }
 0xada   : > { %829 = vrot.lane.b32.xlu2 %v1509_v41, %s1671_s27 }
 0xb34   : > { %v830_v43 = vpop.permute.xlu2 %829 }
 0xb35   : > { %v1973_v44 = vmul.f32 %v830_v43, %v813_v32 }
 0xb37   : > { %v840_v45 = vsel %vm839_vm4, %v1973_v44, %v756_v12 }
 0xb38   : > { %855 = vrot.lane.b32.xlu1 %v840_v45, %s1672_s20 }
 0xbaa   : > { %v856_v46 = vpop.permute.xlu1 %855 }
 0xbab   : > { %1390 = vmatmul.msk.f32.vlgmr.msrb.gmra.mxu3 %vm438_vm9, %v856_v46 }
 0xc2e   : > { %v876_v48 = vpop.f32.mrf.mxu3 }
 0xc2f   : > { %v879_v49 = vadd.f32 %v876_v48, %v853_v47 }
 0xc31   : > { %1510 = vtanh.f32 %v879_v49  ;;  %v1391_v53 = vmul.f32 -1.442695, %v879_v49 }
 0xc33   : > { %1512 = vpow2.f32 %v1391_v53 }
 0xc37   : > { %v1511_v50 = vpop.eup %1510 }
 0xc38   : > { %902 = vrot.lane.b32.xlu2 %v1511_v50, %s1668_s10 }
 0xc39   : > { %v1513_v54 = vpop.eup %1512 }
 0xc3a   : > { %v883_v55 = vadd.f32 1.0, %v1513_v54 }
 0xc3c   : > { %1514 = vrcp.f32 %v883_v55  ;;  %v895_v61 = vand.u32 2147483648, %v883_v55  ;;  %vm889_vm10 = vweird.f32 %v883_v55  ;;  %v893_v62 = vand.u32 2147483647, %v883_v55 }
 0xc3e   : > { %v896_v0 = vor.u32 1.1754944e-38, %v895_v61  ;;  %vm894_vm12 = vcmp.eq.f32.partialorder %v893_v62, 8.507059e+37  ;;  %v758_v61 = vsel %vm755_vm14, %v1955_v11, 0.0 }
 0xc40   : > { %921 = vperm.xlu2 %1467, %v919_v52  }
 0xc42   : > { %v1515_v56 = vpop.eup %1514 }
 0xc43   : > { %v885_v57 = vmul.f32 %v1515_v56, %v883_v55  ;;  %vm890_vm7 = vweird.f32 %v1515_v56  ;;  %v1021_v55 = vld [vmem:[%s1020_s12] sm:$0x3]  ;;  %s2138_s12 = sshll.u32 %s1983_s17, 1  ;;  %s1099_s17 = scalar_lea.vmem %s1871_s24, %s1395_s18 }
 0xc44   : > { %vm891_vm11 = vmor %vm889_vm10, %vm890_vm7 }
 0xc45   : > { %v886_v58 = vsub.f32 1.0, %v885_v57 }
 0xc47   : > { %v887_v59 = vmul.f32 %v1515_v56, %v886_v58 }
 0xc49   : > { %v888_v60 = vadd.f32 %v1515_v56, %v887_v59  ;;  %v1085_v59 = vstv %s2029_s21 }
 0xc4a   : > { %vm1086_vm10 = vcmp.gt.s32.totalorder %v1859_v35, %v1085_v59 }
 0xc4b   : > { %v892_v63 = vsel %vm891_vm11, %v1515_v56, %v888_v60  ;;  %v1087_v60 = vsel %vm1086_vm10, 1, %v1670_v30 }
 0xc4c   : > { %v897_v2 = vsel %vm894_vm12, %v896_v0, %v892_v63 }
 0xc4d   : > { %v900_v6 = vmul.f32 %v897_v2, %v841_v4 }
 0xc92   : > { %v903_v1 = vpop.permute.xlu2 %902 }
 0xc93   : > { %v905_v3 = vmul.f32 %v903_v1, %v897_v2 }
 0xc95   : > { %907 = vrot.lane.b32.xlu0 %v905_v3, %s1669_s9 }
 0xc9a   : > { %v1996_v13 = vpop.permute.xlu2 %921 }
 0xc9b   : > { %vm923_vm13 = vcmp.eq.s32.totalorder %v1996_v13, 1 }
 0xd07   : > { %v908_v8 = vpop.permute.xlu0 %907 }
 0xd08   : > { %v910_v10 = vadd.f32 %v908_v8, %v900_v6 }
 0xd0a   : > { %1516 = vtanh.f32 %v910_v10 }
 0xd10   : > { %v1517_v12 = vpop.eup %1516 }
 0xd11   : > { %913 = vrot.lane.b32.xlu1 %v1517_v12, %s1671_s27 }
 0xd83   : > { %v914_v14 = vpop.permute.xlu1 %913 }
 0xd84   : > { %v1998_v15 = vmul.f32 %v914_v14, %v897_v2 }
 0xd86   : > { %v924_v16 = vsel %vm923_vm13, %v1998_v15, %v840_v45  ;;  %v925_v45 = vsel %vm923_vm13, %v910_v10, %v841_v4 }
 0xd87   : > { %939 = vrot.lane.b32.xlu0 %v924_v16, %s1672_s20 }
 0xdf9   : > { %v940_v17 = vpop.permute.xlu0 %939 }
 0xdfa   : > { %1393 = vmatmul.msk.f32.vlgmr.msrb.gmra.mxu0 %vm438_vm9, %v940_v17  ;;  %v842_v17 = vsel %vm839_vm4, %v1973_v44, 0.0  ;;  %v926_v44 = vsel %vm923_vm13, %v1998_v15, 0.0 }
 0xe77   : > { %v960_v19 = vpop.f32.mrf.mxu0 }
 0xe78   : > { %v963_v20 = vadd.f32 %v960_v19, %v937_v18 }
 0xe7a   : > { %1518 = vtanh.f32 %v963_v20  ;;  %v1394_v24 = vmul.f32 -1.442695, %v963_v20 }
 0xe7c   : > { %1520 = vpow2.f32 %v1394_v24 }
 0xe80   : > { %v1519_v21 = vpop.eup %1518 }
 0xe81   : > { %986 = vrot.lane.b32.xlu1 %v1519_v21, %s1668_s10 }
 0xe82   : > { %v1521_v25 = vpop.eup %1520 }
 0xe83   : > { %v967_v26 = vadd.f32 1.0, %v1521_v25 }
 0xe85   : > { %1522 = vrcp.f32 %v967_v26  ;;  %v979_v33 = vand.u32 2147483648, %v967_v26  ;;  %vm973_vm2 = vweird.f32 %v967_v26  ;;  %v977_v34 = vand.u32 2147483647, %v967_v26 }
 0xe87   : > { %v980_v37 = vor.u32 1.1754944e-38, %v979_v33  ;;  %vm978_vm6 = vcmp.eq.f32.partialorder %v977_v34, 8.507059e+37 }
 0xe89   : > { %1005 = vperm.xlu1 %1466, %v1003_v23  }
 0xe8b   : > { %v1523_v27 = vpop.eup %1522 }
 0xe8c   : > { %v969_v28 = vmul.f32 %v1523_v27, %v967_v26  ;;  %vm974_vm1 = vweird.f32 %v1523_v27 }
 0xe8d   : > { %vm975_vm3 = vmor %vm973_vm2, %vm974_vm1 }
 0xe8e   : > { %v970_v29 = vsub.f32 1.0, %v969_v28 }
 0xe90   : > { %v971_v31 = vmul.f32 %v1523_v27, %v970_v29 }
 0xe92   : > { %v972_v32 = vadd.f32 %v1523_v27, %v971_v31 }
 0xe94   : > { %v976_v36 = vsel %vm975_vm3, %v1523_v27, %v972_v32 }
 0xe95   : > { %v981_v41 = vsel %vm978_vm6, %v980_v37, %v976_v36 }
 0xe96   : > { %v984_v46 = vmul.f32 %v981_v41, %v925_v45 }
 0xef3   : > { %v987_v39 = vpop.permute.xlu1 %986 }
 0xef4   : > { %v989_v43 = vmul.f32 %v987_v39, %v981_v41 }
 0xef6   : > { %991 = vrot.lane.b32.xlu2 %v989_v43, %s1669_s9 }
 0xefb   : > { %v1006_v50 = vpop.permute.xlu1 %1005 }
 0xefc   : > { %vm1007_vm7 = vcmp.eq.s32.totalorder %v1006_v50, 1 }
 0xf50   : > { %v992_v47 = vpop.permute.xlu2 %991 }
 0xf51   : > { %v994_v48 = vadd.f32 %v992_v47, %v984_v46 }
 0xf53   : > { %1524 = vtanh.f32 %v994_v48  ;;  %v1009_v18 = vsel %vm1007_vm7, %v994_v48, %v925_v45 }
 0xf59   : > { %v1525_v49 = vpop.eup %1524 }
 0xf5a   : > { %997 = vrot.lane.b32.xlu0 %v1525_v49, %s1671_s27 }
 0xfcc   : > { %v998_v51 = vpop.permute.xlu0 %997 }
 0xfcd   : > { %v1000_v52 = vmul.f32 %v998_v51, %v981_v41 }
 0xfcf   : > { %v2022_v53 = vsel %vm1007_vm7, %v1000_v52, %v924_v16  ;;  %v1010_v62 = vsel %vm1007_vm7, %v1000_v52, 0.0  ;;  %v590_v16 = vsel %vm587_vm15, %v1898_v7, 0.0 }
 0xfd0   : > { %1023 = vrot.lane.b32.xlu2 %v2022_v53, %s1672_s20 }
0x102a   : > { %v1024_v54 = vpop.permute.xlu2 %1023 }
0x102b   : > { %1396 = vmatmul.msk.f32.vlgmr.msra.gmra.mxu1 %vm438_vm9, %v1024_v54 }
0x10a8   : > { %v1044_v56 = vpop.f32.mrf.mxu1 }
0x10a9   : > { %v1047_v57 = vadd.f32 %v1044_v56, %v1021_v55 }
0x10ab   : > { %1526 = vtanh.f32 %v1047_v57  ;;  %v1397_v63 = vmul.f32 -1.442695, %v1047_v57 }
0x10ad   : > { %1528 = vpow2.f32 %v1397_v63 }
0x10b1   : > { %v1527_v58 = vpop.eup %1526 }
0x10b2   : > { %1070 = vrot.lane.b32.xlu0 %v1527_v58, %s1668_s10  ;;  %s1673_s10 = smov 112  }
0x10b3   : > { %v1529_v0 = vpop.eup %1528 }
0x10b4   : > { %v1051_v1 = vadd.f32 1.0, %v1529_v0 }
0x10b6   : > { %1530 = vrcp.f32 %v1051_v1  ;;  %v1063_v6 = vand.u32 2147483648, %v1051_v1  ;;  %vm1057_vm11 = vweird.f32 %v1051_v1  ;;  %v1061_v9 = vand.u32 2147483647, %v1051_v1 }
0x10b8   : > { %v1064_v8 = vor.u32 1.1754944e-38, %v1063_v6  ;;  %vm1062_vm12 = vcmp.eq.f32.partialorder %v1061_v9, 8.507059e+37 }
0x10ba   : > { %1089 = vperm.xlu0 %1468, %v1087_v60  }
0x10bc   : > { %v1531_v2 = vpop.eup %1530 }
0x10bd   : > { %v1053_v35 = vmul.f32 %v1531_v2, %v1051_v1  ;;  %vm1058_vm9 = vweird.f32 %v1531_v2 }
0x10be   : > { %vm1059_vm14 = vmor %vm1057_vm11, %vm1058_vm9 }
0x10bf   : > { %v1054_v3 = vsub.f32 1.0, %v1053_v35 }
0x10c1   : > { %v1055_v30 = vmul.f32 %v1531_v2, %v1054_v3 }
0x10c2   : > { %760 = vrot.lane.b32.xlu0 %v758_v61, %s1672_s20 }
0x10c3   : > { %v1056_v4 = vadd.f32 %v1531_v2, %v1055_v30 }
0x10c5   : > { %v1060_v11 = vsel %vm1059_vm14, %v1531_v2, %v1056_v4 }
0x10c6   : > { %v1065_v12 = vsel %vm1062_vm12, %v1064_v8, %v1060_v11 }
0x10c7   : > { %v1068_v20 = vmul.f32 %v1065_v12, %v1009_v18 }
0x10ca   : > { %1012 = vrot.lane.b32.xlu0 %v1010_v62, %s1672_s20 }
0x1124   : > { %v1071_v10 = vpop.permute.xlu0 %1070 }
0x1125   : > { %v1073_v14 = vmul.f32 %v1071_v10, %v1065_v12 }
0x1127   : > { %1075 = vrot.lane.b32.xlu1 %v1073_v14, %s1669_s9  ;;  %s595_s9 = scalar_lea.vmem %s1871_s24, %s1375_s11  ;;  %s1368_s11 = sshll.u32 %s1834_s22, 1 }
0x1128   : > { %s388_s19 = scalar_lea.vmem %s2126_s7, %s1368_s11  ;;  %s384_s22 = scalar_lea.vmem %s2125_s6, %s1368_s11 }
0x112c   : > { %v1090_v19 = vpop.permute.xlu0 %1089 }
0x112d   : > { %vm1091_vm0 = vcmp.eq.s32.totalorder %v1090_v19, 1 }
0x112f   : > { %592 = vrot.lane.b32.xlu1 %v590_v16, %s1672_s20 }
0x1134   : > { %v761_v24 = vpop.permute.xlu0 %760 }
0x1137   : > { %844 = vrot.lane.b32.xlu1 %v842_v17, %s1672_s20 }
0x113c   : > { %v1013_v13 = vpop.permute.xlu0 %1012 }
0x1199   : > { %v1076_v21 = vpop.permute.xlu1 %1075 }
0x119a   : > { %v1078_v22 = vadd.f32 %v1076_v21, %v1068_v20 }
0x119c   : > { %1532 = vtanh.f32 %v1078_v22  ;;  %v1093_v23 = vsel %vm1091_vm0, %v1078_v22, %v1009_v18 }
0x119d   : > { %1107 = vrot.lane.b32.xlu0 %v1093_v23, %s1673_s10 }
0x11a1   : > { %v593_v5 = vpop.permute.xlu1 %592 }
0x11a2   : > { %v1533_v7 = vpop.eup %1532  ;;  %596 = vst.msk [vmem:[%s595_s9] sm:$0x3] %vm515_vm8, %v593_v5 }
0x11a3   : > { %1081 = vrot.lane.b32.xlu2 %v1533_v7, %s1671_s27  ;;  %s763_s27 = scalar_lea.vmem %s1871_s24, %s1382_s2 }
0x11a9   : > { %v845_v15 = vpop.permute.xlu1 %844 }
0x11ab   : > { %676 = vrot.lane.b32.xlu2 %v674_v42, %s1672_s20 }
0x11b3   : > { %928 = vrot.lane.b32.xlu2 %v926_v44, %s1672_s20 }
0x11fd   : > { %v1082_v25 = vpop.permute.xlu2 %1081 }
0x11fe   : > { %v1084_v26 = vmul.f32 %v1082_v25, %v1065_v12 }
0x1200   : > { %v1094_v27 = vsel %vm1091_vm0, %v1084_v26, 0.0  ;;  %v1092_v38 = vsel %vm1091_vm0, %v1084_v26, %v2022_v53 }
0x1201   : > { %1096 = vrot.lane.b32.xlu1 %v1094_v27, %s1672_s20  ;;  %1102 = vrot.lane.b32.xlu2 %v1092_v38, %s1672_s20  ;;  %s931_s20 = scalar_lea.vmem %s1871_s24, %s2138_s12 }
0x1205   : > { %v677_v40 = vpop.permute.xlu2 %676 }
0x1206   : > { %680 = vst.msk [vmem:[%s679_s16] sm:$0x3] %vm515_vm8, %v677_v40 }
0x1207   : > { %764 = vst.msk [vmem:[%s763_s27] sm:$0x3] %vm515_vm8, %v761_v24 }
0x1208   : > { %848 = vst.msk [vmem:[%s847_s30] sm:$0x3] %vm515_vm8, %v845_v15 }
0x120d   : > { %v929_v28 = vpop.permute.xlu2 %928 }
0x120e   : > { %932 = vst.msk [vmem:[%s931_s20] sm:$0x3] %vm515_vm8, %v929_v28 }
0x120f   : > { %1016 = vst.msk [vmem:[%s1015_s13] sm:$0x3] %vm515_vm8, %v1013_v13  ;;  %v1108_v29 = vpop.permute.xlu0 %1107 }
0x1210   : > { %1110 = vst.msk [vmem:[%s388_s19] sm:$0x3] %vm515_vm8, %v1108_v29 }
0x125b   : > { %v1103_v31 = vpop.permute.xlu2 %1102 }
0x125c   : > { %1105 = vst.msk [vmem:[%s384_s22] sm:$0x3] %vm515_vm8, %v1103_v31 }
0x1273   : > { %v1097_v32 = vpop.permute.xlu1 %1096 }
0x1274   : > { %1100 = vst.msk [vmem:[%s1099_s17] sm:$0x3] %vm515_vm8, %v1097_v32 }
0x1275 PF: > { %p19_p8 = scmp.ge.s32.totalorder %s1735_s28, 4   ;;  %s2140_s24 = smov %s1654_s25 }
0x1276   : > { %s2141_s25 = smov %s1658_s26  ;;  %s2142_s26 = smov %s1746_s8 }
0x1277   : > { %s2143_s27 = smov %s1735_s28  ;;  %21 = sbr.rel (!%p19_p8) target bundleno = 7 (0x7), region = 139 }
0x127c   :  { %1160 = vsyncpa [#allocation4], 1 }
0x127d   :  { %1162 = vsyncpa [#allocation4 + $0x1], 1 }
0x127e   :  { %1163 = vsyncpa [#allocation6], 1 }
0x127f   :  { %1165 = vsyncpa [#allocation6 + $0x1], 1 }

</bundles_post_ra>
